<compile_context>
chip_gen: v7x
topology: tpu7x:2x2x1
jax: 0.10.0
libtpu: 0.0.40
codegen_flags: <defaults>
</compile_context>

<pallas_src>
import functools
import math

import jax
import jax.numpy as jnp
from jax import lax
from jax.experimental import pallas as pl
from jax.experimental.pallas import tpu as pltpu


def _round_up(a: int, b: int) -> int:
    return (a + b - 1) // b * b


def _gelu_exact(x):
    # PyTorch nn.GELU() default: exact erf-based GELU (f32 math).
    return 0.5 * x * (1.0 + lax.erf(x * 0.7071067811865475))


def prenorm_ff_kernel(x_ref, g_ref, b_ref, w1_ref, b1_ref, w2_ref, b2_ref, o_ref,
                      *, mxu_dtype):
    x_in = x_ref[...]
    x = x_in.astype(jnp.float32)

    # LayerNorm over last dim (eps = 1e-5, PyTorch default); elementwise math in f32.
    mu = jnp.mean(x, axis=-1, keepdims=True)
    var = jnp.mean(jnp.square(x - mu), axis=-1, keepdims=True)
    xn = (x - mu) * lax.rsqrt(var + 1e-5)
    xn = xn * g_ref[...] + b_ref[...]

    # Linear 1 (D -> F) + GELU. MXU operands in mxu_dtype, f32 accumulation.
    h = jnp.dot(xn.astype(mxu_dtype), w1_ref[...],
                preferred_element_type=jnp.float32) + b1_ref[...]
    h = _gelu_exact(h)

    # Linear 2 (F -> D) + residual (residual added in f32, then cast to output dtype).
    y = jnp.dot(h.astype(mxu_dtype), w2_ref[...],
                preferred_element_type=jnp.float32) + b2_ref[...]
    o_ref[...] = (y + x).astype(o_ref.dtype)


def _vmem_bytes(tm, D, F, x_itemsize, w_itemsize):
    # Conservative footprint estimate (assumes double-buffered weights = worst case).
    weights = 2 * (2 * D * F) * w_itemsize          # w1 + w2, 2 pipeline buffers each
    small = 2 * (3 * D + F) * 4                     # gamma / beta / b1 / b2
    io = 2 * 2 * tm * D * x_itemsize                # x tile + out tile, double-buffered
    acts = tm * F * 4 + 4 * tm * D * 4              # f32 intermediates
    return weights + small + io + acts


def prenorm_ff(x, gamma, beta, w1, b1, w2, b2, *, tm=256,
               mxu_dtype=jnp.bfloat16, vmem_budget_bytes=48 * 1024 * 1024):
    """x: (B, S, D); weights stored (in, out). Returns (B, S, D)."""
    B, S, D = x.shape
    F = w1.shape[1]
    N = B * S
    x_dtype = x.dtype
    mxu_dtype = jnp.dtype(mxu_dtype)
    x_isz = jnp.dtype(x_dtype).itemsize
    w_isz = mxu_dtype.itemsize

    # --- token-tile sizing ---------------------------------------------------
    pack = 8 if x_isz >= 4 else 16                  # sublane pack: f32 -> 8 rows, bf16 -> 16
    tm_eff = max(pack, min(int(tm), _round_up(N, pack)))
    tm_eff = _round_up(tm_eff, pack)
    # Shrink the token tile until the (conservative) VMEM estimate fits the budget
    # (budget defaults to <64 MiB so the same tiling is safe on v7x/v6e/v5e).
    while tm_eff > pack and _vmem_bytes(tm_eff, D, F, x_isz, w_isz) > vmem_budget_bytes:
        tm_eff = max(pack, _round_up(tm_eff // 2, pack))
    vmem_limit = int(min(64 * 1024 * 1024,
                         max(2 * _vmem_bytes(tm_eff, D, F, x_isz, w_isz),
                             16 * 1024 * 1024)))

    # --- operand prep (done once in HBM, not per grid step) -------------------
    Np = _round_up(N, tm_eff)
    x2 = x.reshape(N, D)
    if Np != N:
        # Zero-pad the token tail; padded rows are computed (finite) and sliced off.
        x2 = jnp.pad(x2, ((0, Np - N), (0, 0)))

    w1c = w1.astype(mxu_dtype)                      # cast weights once, not in-kernel
    w2c = w2.astype(mxu_dtype)
    g2 = gamma.reshape(1, D).astype(jnp.float32)
    be2 = beta.reshape(1, D).astype(jnp.float32)
    b1_2 = b1.reshape(1, F).astype(jnp.float32)
    b2_2 = b2.reshape(1, D).astype(jnp.float32)

    grid = (Np // tm_eff,)
    kernel = functools.partial(prenorm_ff_kernel, mxu_dtype=mxu_dtype)

    cost = pl.CostEstimate(
        flops=4 * Np * D * F,                       # two matmuls
        transcendentals=Np * F,                     # erf in GELU
        bytes_accessed=(2 * Np * D * x_isz + 2 * D * F * w_isz + (3 * D + F) * 4),
    )

    def build(single_buffer_weights: bool):
        if single_buffer_weights:
            # Constant-index operands: one resident copy (no double-buffering) to
            # halve the weight VMEM footprint (important for v7x's 64 MiB VMEM).
            const = lambda shape: pl.BlockSpec(
                shape, lambda i: (0, 0), pipeline_mode=pl.Buffered(1))
        else:
            const = lambda shape: pl.BlockSpec(shape, lambda i: (0, 0))
        return pl.pallas_call(
            kernel,
            out_shape=jax.ShapeDtypeStruct((Np, D), x_dtype),
            grid_spec=pltpu.PrefetchScalarGridSpec(
                num_scalar_prefetch=0,
                grid=grid,
                in_specs=[
                    pl.BlockSpec((tm_eff, D), lambda i: (i, 0)),   # x tile
                    const((1, D)),     # gamma
                    const((1, D)),     # beta
                    const((D, F)),     # w1 (in, ff)
                    const((1, F)),     # b1
                    const((F, D)),     # w2 (ff, in)
                    const((1, D)),     # b2
                ],
                out_specs=pl.BlockSpec((tm_eff, D), lambda i: (i, 0)),
            ),
            compiler_params=pltpu.CompilerParams(
                dimension_semantics=("parallel",),   # shards grid across v7x's 2 TCs
                vmem_limit_bytes=vmem_limit),
            cost_estimate=cost,
        )

    operands = (x2, g2, be2, w1c, b1_2, w2c, b2_2)
    try:
        out = build(single_buffer_weights=True)(*operands)
    except Exception:
        # Fallback if this JAX build rejects pl.Buffered(1): default double-buffered
        # constant blocks (still correct, ~2x weight VMEM). Genuine errors re-raise here.
        out = build(single_buffer_weights=False)(*operands)

    if Np != N:
        out = out[:N]
    return out.reshape(B, S, D)


def init_params(key, in_dims, ff_dims):
    ks = jax.random.split(key, 6)
    # nn.Linear default init: U(-1/sqrt(fan_in), 1/sqrt(fan_in)); LayerNorm: ones/zeros.
    lim1 = 1.0 / math.sqrt(in_dims)
    lim2 = 1.0 / math.sqrt(ff_dims)
    gamma = jnp.ones((in_dims,), jnp.float32)
    beta = jnp.zeros((in_dims,), jnp.float32)
    w1 = jax.random.uniform(ks[0], (in_dims, ff_dims), jnp.float32, -lim1, lim1)
    b1 = jax.random.uniform(ks[1], (ff_dims,), jnp.float32, -lim1, lim1)
    w2 = jax.random.uniform(ks[2], (ff_dims, in_dims), jnp.float32, -lim2, lim2)
    b2 = jax.random.uniform(ks[3], (in_dims,), jnp.float32, -lim2, lim2)
    return gamma, beta, w1, b1, w2, b2


def reference(x, gamma, beta, w1, b1, w2, b2):
    xf = x.astype(jnp.float32)
    mu = jnp.mean(xf, -1, keepdims=True)
    var = jnp.mean(jnp.square(xf - mu), -1, keepdims=True)
    xn = (xf - mu) * lax.rsqrt(var + 1e-5) * gamma + beta
    h = _gelu_exact(jnp.dot(xn, w1, precision=lax.Precision.HIGHEST) + b1)
    y = jnp.dot(h, w2, precision=lax.Precision.HIGHEST) + b2
    return (y + xf).astype(x.dtype)


if __name__ == "__main__":
    key = jax.random.PRNGKey(0)
    k_x, k_p, k_x3 = jax.random.split(key, 3)

    # Small but lane-dense shapes: D multiple of 128 keeps output stores unmasked.
    B, S, in_dims = 2, 8, 128
    ff_dims = 4 * in_dims  # 512

    x = jax.random.normal(k_x, (B, S, in_dims), jnp.float32)
    params = init_params(k_p, in_dims, ff_dims)
    ref = reference(x, *params)

    # 1) f32 MXU operands: tight check against the high-precision reference.
    out_f32 = jax.block_until_ready(prenorm_ff(x, *params, mxu_dtype=jnp.float32))
    assert out_f32.shape == x.shape
    err = float(jnp.max(jnp.abs(out_f32 - ref)))
    assert err < 2e-3, f"f32 path error too large: {err}"

    # 2) Default fast path: bf16 MXU operands with f32 accumulation.
    out_bf16 = jax.block_until_ready(prenorm_ff(x, *params))
    err_bf = float(jnp.max(jnp.abs(out_bf16 - ref)))
    assert err_bf < 5e-2, f"bf16-MXU path error too large: {err_bf}"

    # 3) Token count not divisible by the tile: exercises padded tail + multi-step grid.
    x3 = jax.random.normal(k_x3, (3, 50, in_dims), jnp.float32)   # N = 150
    ref3 = reference(x3, *params)
    out3 = jax.block_until_ready(prenorm_ff(x3, *params, tm=64, mxu_dtype=jnp.float32))
    err3 = float(jnp.max(jnp.abs(out3 - ref3)))
    assert out3.shape == x3.shape and err3 < 2e-3, f"tail path error too large: {err3}"

    print("KERNEL_OK")
</pallas_src>

<mosaic_0001>
module attributes {stable_mosaic.version = 11 : i64} {
  func.func @prenorm_ff_kernel(%arg0: i32, %arg1: memref<16x128xf32, #tpu.memory_space<vmem>>, %arg2: memref<1x128xf32, #tpu.memory_space<vmem>>, %arg3: memref<1x128xf32, #tpu.memory_space<vmem>>, %arg4: memref<128x512xf32, #tpu.memory_space<vmem>>, %arg5: memref<1x512xf32, #tpu.memory_space<vmem>>, %arg6: memref<512x128xf32, #tpu.memory_space<vmem>>, %arg7: memref<1x128xf32, #tpu.memory_space<vmem>>, %arg8: memref<16x128xf32, #tpu.memory_space<vmem>>) attributes {dimension_semantics = [#tpu.dimension_semantics<parallel>], iteration_bounds = array<i64: 1>, scalar_prefetch = 0 : i64, scratch_operands = 0 : i64, tpu.core_type = #tpu.core_type<tc>, window_params = [{transform_indices = @transform_0, window_bounds = array<i64: 16, 128>}, {pipeline_mode = #tpu.pipeline_mode<synchronous>, transform_indices = @transform_1, window_bounds = array<i64: 1, 128>}, {pipeline_mode = #tpu.pipeline_mode<synchronous>, transform_indices = @transform_2, window_bounds = array<i64: 1, 128>}, {pipeline_mode = #tpu.pipeline_mode<synchronous>, transform_indices = @transform_3, window_bounds = array<i64: 128, 512>}, {pipeline_mode = #tpu.pipeline_mode<synchronous>, transform_indices = @transform_4, window_bounds = array<i64: 1, 512>}, {pipeline_mode = #tpu.pipeline_mode<synchronous>, transform_indices = @transform_5, window_bounds = array<i64: 512, 128>}, {pipeline_mode = #tpu.pipeline_mode<synchronous>, transform_indices = @transform_6, window_bounds = array<i64: 1, 128>}, {transform_indices = @transform_7, window_bounds = array<i64: 16, 128>}]} {
    %c0 = arith.constant 0 : index
    %c0_0 = arith.constant 0 : index
    %0 = vector.load %arg1[%c0, %c0_0] : memref<16x128xf32, #tpu.memory_space<vmem>>, vector<16x128xf32>
    %cst = arith.constant dense<0.000000e+00> : vector<16xf32>
    %1 = vector.multi_reduction <add>, %0, %cst [1] : vector<16x128xf32> to vector<16xf32>
    %2 = vector.shape_cast %1 : vector<16xf32> to vector<16x1xf32>
    %cst_1 = arith.constant 1.280000e+02 : f32
    %3 = vector.broadcast %cst_1 : f32 to vector<16x1xf32>
    %4 = arith.divf %2, %3 : vector<16x1xf32>
    %5 = vector.broadcast %4 : vector<16x1xf32> to vector<16x128xf32>
    %6 = arith.subf %0, %5 : vector<16x128xf32>
    %7 = arith.mulf %6, %6 : vector<16x128xf32>
    %cst_2 = arith.constant dense<0.000000e+00> : vector<16xf32>
    %8 = vector.multi_reduction <add>, %7, %cst_2 [1] : vector<16x128xf32> to vector<16xf32>
    %9 = vector.shape_cast %8 : vector<16xf32> to vector<16x1xf32>
    %cst_3 = arith.constant 1.280000e+02 : f32
    %10 = vector.broadcast %cst_3 : f32 to vector<16x1xf32>
    %11 = arith.divf %9, %10 : vector<16x1xf32>
    %12 = vector.broadcast %4 : vector<16x1xf32> to vector<16x128xf32>
    %13 = arith.subf %0, %12 : vector<16x128xf32>
    %cst_4 = arith.constant 9.99999974E-6 : f32
    %14 = vector.broadcast %cst_4 : f32 to vector<16x1xf32>
    %15 = arith.addf %11, %14 : vector<16x1xf32>
    %16 = math.rsqrt %15 : vector<16x1xf32>
    %17 = vector.broadcast %16 : vector<16x1xf32> to vector<16x128xf32>
    %18 = arith.mulf %13, %17 : vector<16x128xf32>
    %c0_5 = arith.constant 0 : index
    %c0_6 = arith.constant 0 : index
    %19 = vector.load %arg2[%c0_5, %c0_6] : memref<1x128xf32, #tpu.memory_space<vmem>>, vector<1x128xf32>
    %20 = vector.broadcast %19 : vector<1x128xf32> to vector<16x128xf32>
    %21 = arith.mulf %18, %20 : vector<16x128xf32>
    %c0_7 = arith.constant 0 : index
    %c0_8 = arith.constant 0 : index
    %22 = vector.load %arg3[%c0_7, %c0_8] : memref<1x128xf32, #tpu.memory_space<vmem>>, vector<1x128xf32>
    %23 = vector.broadcast %22 : vector<1x128xf32> to vector<16x128xf32>
    %24 = arith.addf %21, %23 : vector<16x128xf32>
    %c0_9 = arith.constant 0 : index
    %c0_10 = arith.constant 0 : index
    %25 = vector.load %arg4[%c0_9, %c0_10] : memref<128x512xf32, #tpu.memory_space<vmem>>, vector<128x512xf32>
    %cst_11 = arith.constant dense<0.000000e+00> : vector<16x512xf32>
    %26 = tpu.matmul %24, %25, %cst_11 {dimension_numbers = #tpu.dot_dimension_numbers<[1], [0], [0], [1], [0, 0, 1, 1], [], []>} : vector<16x128xf32>, vector<128x512xf32>, vector<16x512xf32> -> vector<16x512xf32>
    %c0_12 = arith.constant 0 : index
    %c0_13 = arith.constant 0 : index
    %27 = vector.load %arg5[%c0_12, %c0_13] : memref<1x512xf32, #tpu.memory_space<vmem>>, vector<1x512xf32>
    %28 = vector.broadcast %27 : vector<1x512xf32> to vector<16x512xf32>
    %29 = arith.addf %26, %28 : vector<16x512xf32>
    %cst_14 = arith.constant 5.000000e-01 : f32
    %30 = vector.broadcast %cst_14 : f32 to vector<16x512xf32>
    %31 = arith.mulf %30, %29 : vector<16x512xf32>
    %cst_15 = arith.constant 0.707106769 : f32
    %32 = vector.broadcast %cst_15 : f32 to vector<16x512xf32>
    %33 = arith.mulf %29, %32 : vector<16x512xf32>
    %34 = math.erf %33 : vector<16x512xf32>
    %cst_16 = arith.constant 1.000000e+00 : f32
    %35 = vector.broadcast %cst_16 : f32 to vector<16x512xf32>
    %36 = arith.addf %35, %34 : vector<16x512xf32>
    %37 = arith.mulf %31, %36 : vector<16x512xf32>
    %c0_17 = arith.constant 0 : index
    %c0_18 = arith.constant 0 : index
    %38 = vector.load %arg6[%c0_17, %c0_18] : memref<512x128xf32, #tpu.memory_space<vmem>>, vector<512x128xf32>
    %cst_19 = arith.constant dense<0.000000e+00> : vector<16x128xf32>
    %39 = tpu.matmul %37, %38, %cst_19 {dimension_numbers = #tpu.dot_dimension_numbers<[1], [0], [0], [1], [0, 0, 1, 1], [], []>} : vector<16x512xf32>, vector<512x128xf32>, vector<16x128xf32> -> vector<16x128xf32>
    %c0_20 = arith.constant 0 : index
    %c0_21 = arith.constant 0 : index
    %40 = vector.load %arg7[%c0_20, %c0_21] : memref<1x128xf32, #tpu.memory_space<vmem>>, vector<1x128xf32>
    %41 = vector.broadcast %40 : vector<1x128xf32> to vector<16x128xf32>
    %42 = arith.addf %39, %41 : vector<16x128xf32>
    %43 = arith.addf %42, %0 : vector<16x128xf32>
    %c0_22 = arith.constant 0 : index
    %c0_23 = arith.constant 0 : index
    %44 = vector.load %arg8[%c0_22, %c0_23] : memref<16x128xf32, #tpu.memory_space<vmem>>, vector<16x128xf32>
    tpu.vector_store %arg8[%c0_22, %c0_23], %43 {strides = array<i32>} : memref<16x128xf32, #tpu.memory_space<vmem>>, vector<16x128xf32>,
    return
  }
  func.func @transform_0(%arg0: i32) -> (i32, i32) {
    %c0_i32 = arith.constant 0 : i32
    %c0_i32_0 = arith.constant 0 : i32
    return %arg0, %c0_i32 : i32, i32
  }
  func.func @transform_1(%arg0: i32) -> (i32, i32) {
    %c0_i32 = arith.constant 0 : i32
    %c0_i32_0 = arith.constant 0 : i32
    %c0_i32_1 = arith.constant 0 : i32
    return %c0_i32, %c0_i32_0 : i32, i32
  }
  func.func @transform_2(%arg0: i32) -> (i32, i32) {
    %c0_i32 = arith.constant 0 : i32
    %c0_i32_0 = arith.constant 0 : i32
    %c0_i32_1 = arith.constant 0 : i32
    return %c0_i32, %c0_i32_0 : i32, i32
  }
  func.func @transform_3(%arg0: i32) -> (i32, i32) {
    %c0_i32 = arith.constant 0 : i32
    %c0_i32_0 = arith.constant 0 : i32
    %c0_i32_1 = arith.constant 0 : i32
    return %c0_i32, %c0_i32_0 : i32, i32
  }
  func.func @transform_4(%arg0: i32) -> (i32, i32) {
    %c0_i32 = arith.constant 0 : i32
    %c0_i32_0 = arith.constant 0 : i32
    %c0_i32_1 = arith.constant 0 : i32
    return %c0_i32, %c0_i32_0 : i32, i32
  }
  func.func @transform_5(%arg0: i32) -> (i32, i32) {
    %c0_i32 = arith.constant 0 : i32
    %c0_i32_0 = arith.constant 0 : i32
    %c0_i32_1 = arith.constant 0 : i32
    return %c0_i32, %c0_i32_0 : i32, i32
  }
  func.func @transform_6(%arg0: i32) -> (i32, i32) {
    %c0_i32 = arith.constant 0 : i32
    %c0_i32_0 = arith.constant 0 : i32
    %c0_i32_1 = arith.constant 0 : i32
    return %c0_i32, %c0_i32_0 : i32, i32
  }
  func.func @transform_7(%arg0: i32) -> (i32, i32) {
    %c0_i32 = arith.constant 0 : i32
    %c0_i32_0 = arith.constant 0 : i32
    return %arg0, %c0_i32 : i32, i32
  }
}

module attributes {stable_mosaic.version = 11 : i64} {
  func.func @prenorm_ff_kernel(%arg0: i32, %arg1: memref<16x128xf32, #tpu.memory_space<vmem>>, %arg2: memref<1x128xf32, #tpu.memory_space<vmem>>, %arg3: memref<1x128xf32, #tpu.memory_space<vmem>>, %arg4: memref<128x512xf32, #tpu.memory_space<vmem>>, %arg5: memref<1x512xf32, #tpu.memory_space<vmem>>, %arg6: memref<512x128xf32, #tpu.memory_space<vmem>>, %arg7: memref<1x128xf32, #tpu.memory_space<vmem>>, %arg8: memref<16x128xf32, #tpu.memory_space<vmem>>) attributes {dimension_semantics = [#tpu.dimension_semantics<parallel>], iteration_bounds = array<i64: 1>, scalar_prefetch = 0 : i64, scratch_operands = 0 : i64, tpu.core_type = #tpu.core_type<tc>, window_params = [{transform_indices = @transform_0, window_bounds = array<i64: 16, 128>}, {pipeline_mode = #tpu.pipeline_mode<synchronous>, transform_indices = @transform_1, window_bounds = array<i64: 1, 128>}, {pipeline_mode = #tpu.pipeline_mode<synchronous>, transform_indices = @transform_2, window_bounds = array<i64: 1, 128>}, {pipeline_mode = #tpu.pipeline_mode<synchronous>, transform_indices = @transform_3, window_bounds = array<i64: 128, 512>}, {pipeline_mode = #tpu.pipeline_mode<synchronous>, transform_indices = @transform_4, window_bounds = array<i64: 1, 512>}, {pipeline_mode = #tpu.pipeline_mode<synchronous>, transform_indices = @transform_5, window_bounds = array<i64: 512, 128>}, {pipeline_mode = #tpu.pipeline_mode<synchronous>, transform_indices = @transform_6, window_bounds = array<i64: 1, 128>}, {transform_indices = @transform_7, window_bounds = array<i64: 16, 128>}]} {
    %c0 = arith.constant 0 : index
    %c0_0 = arith.constant 0 : index
    %0 = vector.load %arg1[%c0, %c0_0] : memref<16x128xf32, #tpu.memory_space<vmem>>, vector<16x128xf32>
    %cst = arith.constant dense<0.000000e+00> : vector<16xf32>
    %1 = vector.multi_reduction <add>, %0, %cst [1] : vector<16x128xf32> to vector<16xf32>
    %2 = vector.shape_cast %1 : vector<16xf32> to vector<16x1xf32>
    %cst_1 = arith.constant 1.280000e+02 : f32
    %3 = vector.broadcast %cst_1 : f32 to vector<16x1xf32>
    %4 = arith.divf %2, %3 : vector<16x1xf32>
    %5 = vector.broadcast %4 : vector<16x1xf32> to vector<16x128xf32>
    %6 = arith.subf %0, %5 : vector<16x128xf32>
    %7 = arith.mulf %6, %6 : vector<16x128xf32>
    %cst_2 = arith.constant dense<0.000000e+00> : vector<16xf32>
    %8 = vector.multi_reduction <add>, %7, %cst_2 [1] : vector<16x128xf32> to vector<16xf32>
    %9 = vector.shape_cast %8 : vector<16xf32> to vector<16x1xf32>
    %cst_3 = arith.constant 1.280000e+02 : f32
    %10 = vector.broadcast %cst_3 : f32 to vector<16x1xf32>
    %11 = arith.divf %9, %10 : vector<16x1xf32>
    %12 = vector.broadcast %4 : vector<16x1xf32> to vector<16x128xf32>
    %13 = arith.subf %0, %12 : vector<16x128xf32>
    %cst_4 = arith.constant 9.99999974E-6 : f32
    %14 = vector.broadcast %cst_4 : f32 to vector<16x1xf32>
    %15 = arith.addf %11, %14 : vector<16x1xf32>
    %16 = math.rsqrt %15 : vector<16x1xf32>
    %17 = vector.broadcast %16 : vector<16x1xf32> to vector<16x128xf32>
    %18 = arith.mulf %13, %17 : vector<16x128xf32>
    %c0_5 = arith.constant 0 : index
    %c0_6 = arith.constant 0 : index
    %19 = vector.load %arg2[%c0_5, %c0_6] : memref<1x128xf32, #tpu.memory_space<vmem>>, vector<1x128xf32>
    %20 = vector.broadcast %19 : vector<1x128xf32> to vector<16x128xf32>
    %21 = arith.mulf %18, %20 : vector<16x128xf32>
    %c0_7 = arith.constant 0 : index
    %c0_8 = arith.constant 0 : index
    %22 = vector.load %arg3[%c0_7, %c0_8] : memref<1x128xf32, #tpu.memory_space<vmem>>, vector<1x128xf32>
    %23 = vector.broadcast %22 : vector<1x128xf32> to vector<16x128xf32>
    %24 = arith.addf %21, %23 : vector<16x128xf32>
    %c0_9 = arith.constant 0 : index
    %c0_10 = arith.constant 0 : index
    %25 = vector.load %arg4[%c0_9, %c0_10] : memref<128x512xf32, #tpu.memory_space<vmem>>, vector<128x512xf32>
    %cst_11 = arith.constant dense<0.000000e+00> : vector<16x512xf32>
    %26 = tpu.matmul %24, %25, %cst_11 {dimension_numbers = #tpu.dot_dimension_numbers<[1], [0], [0], [1], [0, 0, 1, 1], [], []>} : vector<16x128xf32>, vector<128x512xf32>, vector<16x512xf32> -> vector<16x512xf32>
    %c0_12 = arith.constant 0 : index
    %c0_13 = arith.constant 0 : index
    %27 = vector.load %arg5[%c0_12, %c0_13] : memref<1x512xf32, #tpu.memory_space<vmem>>, vector<1x512xf32>
    %28 = vector.broadcast %27 : vector<1x512xf32> to vector<16x512xf32>
    %29 = arith.addf %26, %28 : vector<16x512xf32>
    %cst_14 = arith.constant 5.000000e-01 : f32
    %30 = vector.broadcast %cst_14 : f32 to vector<16x512xf32>
    %31 = arith.mulf %30, %29 : vector<16x512xf32>
    %cst_15 = arith.constant 0.707106769 : f32
    %32 = vector.broadcast %cst_15 : f32 to vector<16x512xf32>
    %33 = arith.mulf %29, %32 : vector<16x512xf32>
    %34 = math.erf %33 : vector<16x512xf32>
    %cst_16 = arith.constant 1.000000e+00 : f32
    %35 = vector.broadcast %cst_16 : f32 to vector<16x512xf32>
    %36 = arith.addf %35, %34 : vector<16x512xf32>
    %37 = arith.mulf %31, %36 : vector<16x512xf32>
    %c0_17 = arith.constant 0 : index
    %c0_18 = arith.constant 0 : index
    %38 = vector.load %arg6[%c0_17, %c0_18] : memref<512x128xf32, #tpu.memory_space<vmem>>, vector<512x128xf32>
    %cst_19 = arith.constant dense<0.000000e+00> : vector<16x128xf32>
    %39 = tpu.matmul %37, %38, %cst_19 {dimension_numbers = #tpu.dot_dimension_numbers<[1], [0], [0], [1], [0, 0, 1, 1], [], []>} : vector<16x512xf32>, vector<512x128xf32>, vector<16x128xf32> -> vector<16x128xf32>
    %c0_20 = arith.constant 0 : index
    %c0_21 = arith.constant 0 : index
    %40 = vector.load %arg7[%c0_20, %c0_21] : memref<1x128xf32, #tpu.memory_space<vmem>>, vector<1x128xf32>
    %41 = vector.broadcast %40 : vector<1x128xf32> to vector<16x128xf32>
    %42 = arith.addf %39, %41 : vector<16x128xf32>
    %43 = arith.addf %42, %0 : vector<16x128xf32>
    %c0_22 = arith.constant 0 : index
    %c0_23 = arith.constant 0 : index
    %44 = vector.load %arg8[%c0_22, %c0_23] : memref<16x128xf32, #tpu.memory_space<vmem>>, vector<16x128xf32>
    tpu.vector_store %arg8[%c0_22, %c0_23], %43 {strides = array<i32>} : memref<16x128xf32, #tpu.memory_space<vmem>>, vector<16x128xf32>,
    return
  }
  func.func @transform_0(%arg0: i32) -> (i32, i32) {
    %c0_i32 = arith.constant 0 : i32
    %c0_i32_0 = arith.constant 0 : i32
    return %arg0, %c0_i32 : i32, i32
  }
  func.func @transform_1(%arg0: i32) -> (i32, i32) {
    %c0_i32 = arith.constant 0 : i32
    %c0_i32_0 = arith.constant 0 : i32
    %c0_i32_1 = arith.constant 0 : i32
    return %c0_i32, %c0_i32_0 : i32, i32
  }
  func.func @transform_2(%arg0: i32) -> (i32, i32) {
    %c0_i32 = arith.constant 0 : i32
    %c0_i32_0 = arith.constant 0 : i32
    %c0_i32_1 = arith.constant 0 : i32
    return %c0_i32, %c0_i32_0 : i32, i32
  }
  func.func @transform_3(%arg0: i32) -> (i32, i32) {
    %c0_i32 = arith.constant 0 : i32
    %c0_i32_0 = arith.constant 0 : i32
    %c0_i32_1 = arith.constant 0 : i32
    return %c0_i32, %c0_i32_0 : i32, i32
  }
  func.func @transform_4(%arg0: i32) -> (i32, i32) {
    %c0_i32 = arith.constant 0 : i32
    %c0_i32_0 = arith.constant 0 : i32
    %c0_i32_1 = arith.constant 0 : i32
    return %c0_i32, %c0_i32_0 : i32, i32
  }
  func.func @transform_5(%arg0: i32) -> (i32, i32) {
    %c0_i32 = arith.constant 0 : i32
    %c0_i32_0 = arith.constant 0 : i32
    %c0_i32_1 = arith.constant 0 : i32
    return %c0_i32, %c0_i32_0 : i32, i32
  }
  func.func @transform_6(%arg0: i32) -> (i32, i32) {
    %c0_i32 = arith.constant 0 : i32
    %c0_i32_0 = arith.constant 0 : i32
    %c0_i32_1 = arith.constant 0 : i32
    return %c0_i32, %c0_i32_0 : i32, i32
  }
  func.func @transform_7(%arg0: i32) -> (i32, i32) {
    %c0_i32 = arith.constant 0 : i32
    %c0_i32_0 = arith.constant 0 : i32
    return %arg0, %c0_i32 : i32, i32
  }
}

</mosaic_0001>

<bundles_post_ra>
// kernel: tpu_custom_call.1
= control target key start
LH: loop header
LB: loop body
LE: loop exit
PB: predicated region body
PF: predicated region fallthrough
CT: control target
= control target key end

     0   :  { %12 = vsyncpa [#allocation3], 0  ;;  %s1106_s0 = inlined_call_operand.hbm [shape: f32[16,128], index: 0, kind: input, shape index: {}]   ;;  %s1107_s1 = inlined_call_operand.vmem [shape: f32[1,128], index: 1, kind: input, shape index: {}]   ;;  %s1108_s2 = inlined_call_operand.vmem [shape: f32[1,128], index: 2, kind: input, shape index: {}]   ;;  %s1109_s3 = inlined_call_operand.hbm [shape: f32[128,512], index: 3, kind: input, shape index: {}]   ;;  %s1110_s4 = inlined_call_operand.vmem [shape: f32[1,512], index: 4, kind: input, shape index: {}]   ;;  %s1111_s5 = inlined_call_operand.hbm [shape: f32[512,128], index: 5, kind: input, shape index: {}]   ;;  %s1112_s6 = inlined_call_operand.vmem [shape: f32[1,128], index: 6, kind: input, shape index: {}]   ;;  %s1113_s7 = inlined_call_operand.hbm [shape: f32[16,128], index: 7, kind: output, shape index: {}]  }
   0x1   :  { %13 = vsyncpa [#allocation6], 0 }
   0x2   :  { %14 = vsyncpa [#allocation4], 0  ;;  %s964_s24 = smov [#allocation5]   ;;  %s870_s28 = scalar_lea.hbm %s1109_s3, 8192 }
   0x3   :  { %s36_s25 = sshll.u32 %s964_s24, 4  ;;  %p871_p0 = scmp.ne.s32.totalorder %s1109_s3, %s870_s28  ;;  %s37_s25 = int_to_ptr.vmem [resolvable:$true] %s36_s25 }
   0x4   :  { %p874_p1 = scmp.lt.u32.totalorder %s870_s28, %s1109_s3 }
   0x6   :  { %p876_p2 = pnand %p874_p1, %p871_p0 }
   0x8   :  { %879 = shalt.err (!%p876_p2)
}
   0x9   :  { %s880_s10 = scalar_lea.vmem %s37_s25, 8192  ;;  %p885_p4 = scmp.lt.s32.totalorder %s37_s25, %s37_s25 }
   0xa   :  { %p881_p3 = scmp.ne.s32.totalorder %s37_s25, %s880_s10  ;;  %p886_p5 = scmp.lt.s32.totalorder %s880_s10, %s880_s10 }
   0xc   :  { %p887_p6 = por %p886_p5, %p885_p4 }
   0xe   :  { %p888_p7 = pnand %p887_p6, %p881_p3 }
  0x10   :  { %891 = shalt.err (!%p888_p7)
}
  0x11   :  { %s965_s11 = smov 512   ;;  %s966_s12 = smov 32  }
  0x12   :  { %42 = dma.hbm_to_vmem [thread:$0]  %s1109_s3, 8192, %s37_s25, [#allocation6], %s965_s11, %s965_s11, %s966_s12  }
  0x13   :  { %s967_s15 = smov [#allocation2]   ;;  %s892_s19 = scalar_lea.hbm %s1106_s0, 256 }
  0x14   :  { %s20_s16 = sshll.u32 %s967_s15, 4  ;;  %p893_p8 = scmp.ne.s32.totalorder %s1106_s0, %s892_s19  ;;  %s21_s16 = int_to_ptr.vmem [resolvable:$true] %s20_s16 }
  0x15   :  { %p896_p9 = scmp.lt.u32.totalorder %s892_s19, %s1106_s0 }
  0x17   :  { %p898_p10 = pnand %p896_p9, %p893_p8 }
  0x19   :  { %901 = shalt.err (!%p898_p10)
}
  0x1a   :  { %s902_s24 = scalar_lea.vmem %s21_s16, 256  ;;  %p907_p12 = scmp.lt.s32.totalorder %s21_s16, %s21_s16 }
  0x1b   :  { %p903_p11 = scmp.ne.s32.totalorder %s21_s16, %s902_s24  ;;  %p908_p13 = scmp.lt.s32.totalorder %s902_s24, %s902_s24 }
  0x1d   :  { %p909_p0 = por %p908_p13, %p907_p12 }
  0x1f   :  { %p910_p1 = pnand %p909_p0, %p903_p11 }
  0x21   :  { %913 = shalt.err (!%p910_p1)
}
  0x22   :  { %s968_s3 = smov 128   ;;  %s969_s25 = smov 8  }
  0x23   :  { %26 = dma.hbm_to_vmem [thread:$0]  %s1106_s0, 256, %s21_s16, [#allocation3], %s968_s3, %s968_s3, %s969_s25  }
  0x24   :  { %s970_s28 = smov [#allocation7]   ;;  %s914_s9 = scalar_lea.hbm %s1111_s5, 8192 }
  0x25   :  { %s50_s29 = sshll.u32 %s970_s28, 4  ;;  %p915_p2 = scmp.ne.s32.totalorder %s1111_s5, %s914_s9  ;;  %s51_s29 = int_to_ptr.vmem [resolvable:$true] %s50_s29 }
  0x26   :  { %p918_p3 = scmp.lt.u32.totalorder %s914_s9, %s1111_s5 }
  0x28   :  { %p920_p4 = pnand %p918_p3, %p915_p2 }
  0x2a   :  { %923 = shalt.err (!%p920_p4)
}
  0x2b   :  { %s924_s14 = scalar_lea.vmem %s51_s29, 8192  ;;  %p929_p6 = scmp.lt.s32.totalorder %s51_s29, %s51_s29 }
  0x2c   :  { %p925_p5 = scmp.ne.s32.totalorder %s51_s29, %s924_s14  ;;  %p930_p7 = scmp.lt.s32.totalorder %s924_s14, %s924_s14 }
  0x2e   :  { %p931_p8 = por %p930_p7, %p929_p6 }
  0x30   :  { %p932_p9 = pnand %p931_p8, %p925_p5 }
  0x32   :  { %935 = shalt.err (!%p932_p9)
}
  0x33   :  { %56 = dma.hbm_to_vmem [thread:$0]  %s1111_s5, 8192, %s51_s29, [#allocation6], %s968_s3, %s968_s3, %s969_s25  }
  0x34   :  { %958 = dma.done.wait [#allocation3], 256  }
  0x35   :  { %959 = vsyncadd [#allocation3], 4294967040 }
  0x36   :  { %960 = dma.done.wait [#allocation6], 16384  }
  0x37   :  { %961 = vsyncadd [#allocation6], 4294950912  ;;  %v1055_v0 = vld [vmem:[#allocation2] sm:$0xff]  ;;  %v1058_v1 = vld [vmem:[#allocation2 + $0x8] sm:$0xff]  ;;  %s972_s20 = smov [#allocation8]  }
  0x38   :  { %70 = vadd.xlane.f32.xlu0 %v1055_v0  ;;  %v112_v2 = vld [vmem:[#allocation5 + $0x8] sm:$0xff]  ;;  %v114_v4 = vld [vmem:[#allocation5 + $0x18] sm:$0xff]  ;;  %v111_v7 = vld [vmem:[#allocation5] sm:$0xff]  ;;  %s621_s21 = sshll.u32 %s972_s20, 4  ;;  %s622_s21 = int_to_ptr.vmem [resolvable:$true] %s621_s21 }
  0x39   :  { %v116_v3 = vld [vmem:[#allocation5 + $0x28] sm:$0xff]  ;;  %v118_v6 = vld [vmem:[#allocation5 + $0x38] sm:$0xff]  ;;  %v115_v8 = vld [vmem:[#allocation5 + $0x20] sm:$0xff]  ;;  %p941_p11 = scmp.lt.s32.totalorder %s622_s21, %s622_s21 }
  0x3a   :  { %v713_v5 = vpack.c.bf16 %v116_v3, %v112_v2  ;;  %v745_v9 = vpack.c.bf16 %v118_v6, %v114_v4  ;;  %v715_v10 = vpack.c.bf16 %v115_v8, %v111_v7  ;;  %v113_v11 = vld [vmem:[#allocation5 + $0x10] sm:$0xff]  ;;  %v120_v13 = vld [vmem:[#allocation5 + $0x48] sm:$0xff]  ;;  %v122_v16 = vld [vmem:[#allocation5 + $0x58] sm:$0xff] }
  0x3b   :  { %v117_v12 = vld [vmem:[#allocation5 + $0x30] sm:$0xff]  ;;  %v124_v15 = vld [vmem:[#allocation5 + $0x68] sm:$0xff]  ;;  %v126_v17 = vld [vmem:[#allocation5 + $0x78] sm:$0xff] }
  0x3c   :  { %72 = vadd.xlane.f32.xlu0 %v1058_v1  ;;  %714 = vmatprep.subr.bf16.mxu0 %v713_v5  ;;  %v747_v14 = vpack.c.bf16 %v117_v12, %v113_v11  ;;  %v717_v18 = vpack.c.bf16 %v124_v15, %v120_v13  ;;  %v749_v19 = vpack.c.bf16 %v126_v17, %v122_v16  ;;  %v119_v20 = vld [vmem:[#allocation5 + $0x40] sm:$0xff]  ;;  %v121_v22 = vld [vmem:[#allocation5 + $0x50] sm:$0xff]  ;;  %v128_v25 = vld [vmem:[#allocation5 + $0x88] sm:$0xff] }
  0x3d   :  { %746 = vmatprep.subr.bf16.mxu1 %v745_v9  ;;  %716 = vmatpush1.bf16.msra.mxu0 %v715_v10  ;;  %v123_v21 = vld [vmem:[#allocation5 + $0x60] sm:$0xff]  ;;  %v125_v24 = vld [vmem:[#allocation5 + $0x70] sm:$0xff]  ;;  %v132_v26 = vld [vmem:[#allocation5 + $0xa8] sm:$0xff] }
  0x3e   :  { %748 = vmatpush1.bf16.msra.mxu1 %v747_v14  ;;  %v719_v23 = vpack.c.bf16 %v123_v21, %v119_v20  ;;  %718 = vmatprep.subr.bf16.mxu0 %v717_v18  ;;  %v751_v27 = vpack.c.bf16 %v125_v24, %v121_v22  ;;  %v721_v28 = vpack.c.bf16 %v132_v26, %v128_v25  ;;  %v130_v29 = vld [vmem:[#allocation5 + $0x98] sm:$0xff]  ;;  %v127_v31 = vld [vmem:[#allocation5 + $0x80] sm:$0xff]  ;;  %v129_v34 = vld [vmem:[#allocation5 + $0x90] sm:$0xff]  ;;  %v971_v24 = vmov 0.0  }
  0x3f   :  { %750 = vmatprep.subr.bf16.mxu1 %v749_v19  ;;  %v134_v30 = vld [vmem:[#allocation5 + $0xb8] sm:$0xff]  ;;  %v131_v33 = vld [vmem:[#allocation5 + $0xa0] sm:$0xff]  ;;  %v133_v35 = vld [vmem:[#allocation5 + $0xb0] sm:$0xff]  ;;  %261 = vmatprep.mubr.f32.mxu0 %v971_v24 }
  0x40   :  { %v753_v32 = vpack.c.bf16 %v134_v30, %v130_v29  ;;  %v723_v36 = vpack.c.bf16 %v131_v33, %v127_v31  ;;  %v755_v37 = vpack.c.bf16 %v133_v35, %v129_v34  ;;  %v136_v46 = vld [vmem:[#allocation5 + $0xc8] sm:$0xff]  ;;  %v138_v48 = vld [vmem:[#allocation5 + $0xd8] sm:$0xff]  ;;  %v135_v51 = vld [vmem:[#allocation5 + $0xc0] sm:$0xff]  ;;  %338 = vmatprep.mubr.f32.mxu1 %v971_v24 }
  0x41   :  { %720 = vmatpush1.bf16.msra.mxu0 %v719_v23  ;;  %v140_v47 = vld [vmem:[#allocation5 + $0xe8] sm:$0xff]  ;;  %v142_v50 = vld [vmem:[#allocation5 + $0xf8] sm:$0xff]  ;;  %v139_v52 = vld [vmem:[#allocation5 + $0xe0] sm:$0xff] }
  0x42   :  { %752 = vmatpush1.bf16.msra.mxu1 %v751_v27  ;;  %722 = vmatprep.subr.bf16.mxu0 %v721_v28  ;;  %v725_v49 = vpack.c.bf16 %v140_v47, %v136_v46  ;;  %v757_v53 = vpack.c.bf16 %v142_v50, %v138_v48  ;;  %v727_v54 = vpack.c.bf16 %v139_v52, %v135_v51  ;;  %v137_v55 = vld [vmem:[#allocation5 + $0xd0] sm:$0xff]  ;;  %v144_v58 = vld [vmem:[#allocation5 + $0x108] sm:$0xff]  ;;  %v146_v60 = vld [vmem:[#allocation5 + $0x118] sm:$0xff] }
  0x43   :  { %754 = vmatprep.subr.bf16.mxu1 %v753_v32  ;;  %v141_v56 = vld [vmem:[#allocation5 + $0xf0] sm:$0xff]  ;;  %v148_v59 = vld [vmem:[#allocation5 + $0x128] sm:$0xff]  ;;  %v150_v62 = vld [vmem:[#allocation5 + $0x138] sm:$0xff] }
  0x44   :  { %v759_v57 = vpack.c.bf16 %v141_v56, %v137_v55  ;;  %v729_v61 = vpack.c.bf16 %v148_v59, %v144_v58  ;;  %v143_v63 = vld [vmem:[#allocation5 + $0x100] sm:$0xff]  ;;  %v761_v3 = vpack.c.bf16 %v150_v62, %v146_v60  ;;  %v145_v5 = vld [vmem:[#allocation5 + $0x110] sm:$0xff]  ;;  %v152_v8 = vld [vmem:[#allocation5 + $0x148] sm:$0xff] }
  0x45   :  { %724 = vmatpush1.bf16.msra.mxu0 %v723_v36  ;;  %v147_v2 = vld [vmem:[#allocation5 + $0x120] sm:$0xff]  ;;  %v149_v6 = vld [vmem:[#allocation5 + $0x130] sm:$0xff]  ;;  %v156_v9 = vld [vmem:[#allocation5 + $0x168] sm:$0xff] }
  0x46   :  { %756 = vmatpush1.bf16.msra.mxu1 %v755_v37  ;;  %726 = vmatprep.subr.bf16.mxu0 %v725_v49  ;;  %v731_v4 = vpack.c.bf16 %v147_v2, %v143_v63  ;;  %v763_v7 = vpack.c.bf16 %v149_v6, %v145_v5  ;;  %v154_v10 = vld [vmem:[#allocation5 + $0x158] sm:$0xff]  ;;  %v733_v11 = vpack.c.bf16 %v156_v9, %v152_v8  ;;  %v151_v13 = vld [vmem:[#allocation5 + $0x140] sm:$0xff]  ;;  %v153_v17 = vld [vmem:[#allocation5 + $0x150] sm:$0xff] }
  0x47   :  { %758 = vmatprep.subr.bf16.mxu1 %v757_v53  ;;  %v158_v12 = vld [vmem:[#allocation5 + $0x178] sm:$0xff]  ;;  %v155_v14 = vld [vmem:[#allocation5 + $0x160] sm:$0xff]  ;;  %v157_v18 = vld [vmem:[#allocation5 + $0x170] sm:$0xff] }
  0x48   :  { %v765_v15 = vpack.c.bf16 %v158_v12, %v154_v10  ;;  %v735_v16 = vpack.c.bf16 %v155_v14, %v151_v13  ;;  %v160_v19 = vld [vmem:[#allocation5 + $0x188] sm:$0xff]  ;;  %v767_v20 = vpack.c.bf16 %v157_v18, %v153_v17  ;;  %v162_v22 = vld [vmem:[#allocation5 + $0x198] sm:$0xff]  ;;  %v159_v27 = vld [vmem:[#allocation5 + $0x180] sm:$0xff] }
  0x49   :  { %728 = vmatpush1.bf16.msra.mxu0 %v727_v54  ;;  %v164_v21 = vld [vmem:[#allocation5 + $0x1a8] sm:$0xff]  ;;  %v166_v23 = vld [vmem:[#allocation5 + $0x1b8] sm:$0xff]  ;;  %v163_v28 = vld [vmem:[#allocation5 + $0x1a0] sm:$0xff] }
  0x4a   :  { %760 = vmatpush1.bf16.msra.mxu1 %v759_v57  ;;  %730 = vmatprep.subr.bf16.mxu0 %v729_v61  ;;  %v737_v25 = vpack.c.bf16 %v164_v21, %v160_v19  ;;  %v769_v26 = vpack.c.bf16 %v166_v23, %v162_v22  ;;  %v161_v29 = vld [vmem:[#allocation5 + $0x190] sm:$0xff]  ;;  %v739_v30 = vpack.c.bf16 %v163_v28, %v159_v27  ;;  %v168_v32 = vld [vmem:[#allocation5 + $0x1c8] sm:$0xff]  ;;  %v170_v36 = vld [vmem:[#allocation5 + $0x1d8] sm:$0xff] }
  0x4b   :  { %762 = vmatprep.subr.bf16.mxu1 %v761_v3  ;;  %v165_v31 = vld [vmem:[#allocation5 + $0x1b0] sm:$0xff]  ;;  %v172_v33 = vld [vmem:[#allocation5 + $0x1e8] sm:$0xff]  ;;  %v174_v37 = vld [vmem:[#allocation5 + $0x1f8] sm:$0xff] }
  0x4c   :  { %v771_v34 = vpack.c.bf16 %v165_v31, %v161_v29  ;;  %v741_v35 = vpack.c.bf16 %v172_v33, %v168_v32  ;;  %v407_v47 = vld [vmem:[#allocation7 + $0x80] sm:$0xff]  ;;  %v408_v48 = vld [vmem:[#allocation7 + $0x88] sm:$0xff]  ;;  %v634_v60 = vld [vmem:[%s1107_s1] ss:$0 sm:$0xff] }
  0x4d   :  { %732 = vmatpush1.bf16.msra.mxu0 %v731_v4  ;;  %v439_v49 = vld [vmem:[#allocation7 + $0x180] sm:$0xff]  ;;  %v777_v50 = vpack.c.bf16 %v408_v48, %v407_v47  ;;  %v440_v51 = vld [vmem:[#allocation7 + $0x188] sm:$0xff]  ;;  %v635_v62 = vld [vmem:[%s1108_s2] ss:$0 sm:$0xff] }
  0x4e   :  { %764 = vmatpush1.bf16.msra.mxu1 %v763_v7  ;;  %734 = vmatprep.subr.bf16.mxu0 %v733_v11  ;;  %v809_v52 = vpack.c.bf16 %v440_v51, %v439_v49  ;;  %v391_v63 = vld [vmem:[#allocation7] sm:$0xff]  ;;  %v392_v2 = vld [vmem:[#allocation7 + $0x8] sm:$0xff]  ;;  %v409_v5 = vld [vmem:[#allocation7 + $0x90] sm:$0xff] }
  0x4f   :  { %766 = vmatprep.subr.bf16.mxu1 %v765_v15  ;;  %v423_v3 = vld [vmem:[#allocation7 + $0x100] sm:$0xff]  ;;  %v424_v4 = vld [vmem:[#allocation7 + $0x108] sm:$0xff]  ;;  %v410_v7 = vld [vmem:[#allocation7 + $0x98] sm:$0xff]  ;;  %v779_v13 = vpack.c.bf16 %v392_v2, %v391_v63 }
  0x50   :  { %v441_v8 = vld [vmem:[#allocation7 + $0x190] sm:$0xff]  ;;  %v442_v9 = vld [vmem:[#allocation7 + $0x198] sm:$0xff]  ;;  %v811_v14 = vpack.c.bf16 %v424_v4, %v423_v3  ;;  %v412_v22 = vld [vmem:[#allocation7 + $0xa8] sm:$0xff] }
  0x51   :  { %736 = vmatpush1.bf16.msra.mxu0 %v735_v16  ;;  %v394_v15 = vld [vmem:[#allocation7 + $0x18] sm:$0xff]  ;;  %v781_v16 = vpack.c.bf16 %v410_v7, %v409_v5  ;;  %v813_v17 = vpack.c.bf16 %v442_v9, %v441_v8  ;;  %v425_v18 = vld [vmem:[#allocation7 + $0x110] sm:$0xff]  ;;  %v443_v23 = vld [vmem:[#allocation7 + $0x1a0] sm:$0xff] }
  0x52   :  { %768 = vmatpush1.bf16.msra.mxu1 %v767_v20  ;;  %738 = vmatprep.subr.bf16.mxu0 %v737_v25  ;;  %v426_v19 = vld [vmem:[#allocation7 + $0x118] sm:$0xff]  ;;  %v411_v20 = vld [vmem:[#allocation7 + $0xa0] sm:$0xff]  ;;  %v444_v25 = vld [vmem:[#allocation7 + $0x1a8] sm:$0xff] }
  0x53   :  { %770 = vmatprep.subr.bf16.mxu1 %v769_v26  ;;  %v815_v27 = vpack.c.bf16 %v426_v19, %v425_v18  ;;  %v395_v28 = vld [vmem:[#allocation7 + $0x20] sm:$0xff]  ;;  %v785_v29 = vpack.c.bf16 %v412_v22, %v411_v20  ;;  %v396_v31 = vld [vmem:[#allocation7 + $0x28] sm:$0xff]  ;;  %v430_v47 = vld [vmem:[#allocation7 + $0x138] sm:$0xff] }
  0x54   :  { %v427_v32 = vld [vmem:[#allocation7 + $0x120] sm:$0xff]  ;;  %v428_v33 = vld [vmem:[#allocation7 + $0x128] sm:$0xff]  ;;  %v449_v63 = vld [vmem:[#allocation7 + $0x1d0] sm:$0xff] }
  0x55   :  { %740 = vmatpush1.bf16.msra.mxu0 %v739_v30  ;;  %v817_v30 = vpack.c.bf16 %v444_v25, %v443_v23  ;;  %v415_v49 = vld [vmem:[#allocation7 + $0xc0] sm:$0xff]  ;;  %v450_v3 = vld [vmem:[#allocation7 + $0x1d8] sm:$0xff]  ;;  %v401_v4 = vld [vmem:[#allocation7 + $0x50] sm:$0xff] }
  0x56   :  { %772 = vmatpush1.bf16.msra.mxu1 %v771_v34  ;;  %742 = vmatprep.subr.bf16.mxu0 %v741_v35  ;;  %v787_v34 = vpack.c.bf16 %v396_v31, %v395_v28  ;;  %v819_v35 = vpack.c.bf16 %v428_v33, %v427_v32  ;;  %v447_v51 = vld [vmem:[#allocation7 + $0x1c0] sm:$0xff]  ;;  %v402_v5 = vld [vmem:[#allocation7 + $0x58] sm:$0xff]  ;;  %v433_v8 = vld [vmem:[#allocation7 + $0x150] sm:$0xff] }
  0x57   :  { %v799_v7 = vpack.c.bf16 %v402_v5, %v401_v4  ;;  %v434_v9 = vld [vmem:[#allocation7 + $0x158] sm:$0xff]  ;;  %v435_v19 = vld [vmem:[#allocation7 + $0x160] sm:$0xff]  ;;  %v436_v20 = vld [vmem:[#allocation7 + $0x168] sm:$0xff] }
  0x58   :  { %v421_v22 = vld [vmem:[#allocation7 + $0xf0] sm:$0xff]  ;;  %v422_v23 = vld [vmem:[#allocation7 + $0xf8] sm:$0xff] }
  0x59   :  { %v453_v25 = vld [vmem:[#allocation7 + $0x1f0] sm:$0xff]  ;;  %v406_v28 = vld [vmem:[#allocation7 + $0x78] sm:$0xff] }
  0x5a   :  { %v437_v31 = vld [vmem:[#allocation7 + $0x170] sm:$0xff]  ;;  %v438_v32 = vld [vmem:[#allocation7 + $0x178] sm:$0xff] }
  0x5b   :  { %v839_v33 = vpack.c.bf16 %v438_v32, %v437_v31 }
  0xc5   :  { %v71_v38 = vpop.xlane.xlu0 %70 }
  0xc6   :  { %v75_v39 = vmul.f32 0.0078125, %v71_v38  ;;  %v167_v38 = vld [vmem:[#allocation5 + $0x1c0] sm:$0xff] }
  0xc8   :  { %v1062_v40 = vsub.f32 %v1055_v0, %v75_v39  ;;  %v773_v39 = vpack.c.bf16 %v174_v37, %v170_v36  ;;  %v414_v36 = vld [vmem:[#allocation7 + $0xb8] sm:$0xff]  ;;  %v445_v37 = vld [vmem:[#allocation7 + $0x1b0] sm:$0xff] }
  0xc9   :  { %v73_v41 = vpop.xlane.xlu0 %72 }
  0xca   :  { %v76_v42 = vmul.f32 0.0078125, %v73_v41  ;;  %v79_v43 = vmul.f32 %v1062_v40, %v1062_v40  ;;  %v171_v41 = vld [vmem:[#allocation5 + $0x1e0] sm:$0xff]  ;;  %774 = vmatprep.subr.bf16.mxu1 %v773_v39  ;;  %v446_v39 = vld [vmem:[#allocation7 + $0x1b8] sm:$0xff] }
  0xcc   :  { %v1067_v44 = vsub.f32 %v1058_v1, %v76_v42  ;;  %81 = vadd.xlane.f32.xlu1 %v79_v43  ;;  %v169_v42 = vld [vmem:[#allocation5 + $0x1d0] sm:$0xff] }
  0xcd   :  { %v173_v43 = vld [vmem:[#allocation5 + $0x1f0] sm:$0xff] }
  0xce   :  { %v80_v45 = vmul.f32 %v1067_v44, %v1067_v44  ;;  %v775_v46 = vpack.c.bf16 %v173_v43, %v169_v42  ;;  %v398_v42 = vld [vmem:[#allocation7 + $0x38] sm:$0xff]  ;;  %v821_v43 = vpack.c.bf16 %v446_v39, %v445_v37  ;;  %v175_v37 = vld [vmem:[%s1110_s4] sm:$0xf] }
  0xd0   :  { %83 = vadd.xlane.f32.xlu1 %v80_v45  ;;  %v743_v45 = vpack.c.bf16 %v171_v41, %v167_v38  ;;  %776 = vmatpush1.bf16.msra.mxu1 %v775_v46  ;;  %v397_v41 = vld [vmem:[#allocation7 + $0x30] sm:$0xff] }
  0xd1   :  { %810 = vmatprep.subr.bf16.mxu1 %v809_v52  ;;  %v429_v46 = vld [vmem:[#allocation7 + $0x130] sm:$0xff] }
  0xd2   :  { %744 = vmatpush1.bf16.msra.mxu0 %v743_v45  ;;  %v791_v45 = vpack.c.bf16 %v398_v42, %v397_v41  ;;  %v823_v48 = vpack.c.bf16 %v430_v47, %v429_v46 }
  0xd3   :  { %778 = vmatprep.subr.bf16.mxu0 %v777_v50  ;;  %v416_v50 = vld [vmem:[#allocation7 + $0xc8] sm:$0xff] }
  0xd4   :  { %v793_v52 = vpack.c.bf16 %v416_v50, %v415_v49 }
 0x159   :  { %v82_v53 = vpop.xlane.xlu1 %81 }
 0x15a   :  { %v85_v54 = vmul.f32 0.0078125, %v82_v53  ;;  %v448_v53 = vld [vmem:[#allocation7 + $0x1c8] sm:$0xff] }
 0x15c   :  { %v87_v55 = vadd.f32 1e-05, %v85_v54  ;;  %v399_v54 = vld [vmem:[#allocation7 + $0x40] sm:$0xff] }
 0x15d   :  { %v84_v56 = vpop.xlane.xlu1 %83 }
 0x15e   :  { %850 = vrsqrt.f32 %v87_v55  ;;  %v86_v57 = vmul.f32 0.0078125, %v84_v56  ;;  %v400_v55 = vld [vmem:[#allocation7 + $0x48] sm:$0xff]  ;;  %v825_v56 = vpack.c.bf16 %v448_v53, %v447_v51 }
 0x160   :  { %v88_v58 = vadd.f32 1e-05, %v86_v57  ;;  %v795_v57 = vpack.c.bf16 %v400_v55, %v399_v54 }
 0x162   :  { %852 = vrsqrt.f32 %v88_v58  ;;  %v431_v58 = vld [vmem:[#allocation7 + $0x140] sm:$0xff] }
 0x168   :  { %v851_v59 = vpop.eup %850 }
 0x169   :  { %v91_v61 = vmul.f32 %v851_v59, %v1062_v40  ;;  %v393_v40 = vld [vmem:[#allocation7 + $0x10] sm:$0xff]  ;;  %v432_v59 = vld [vmem:[#allocation7 + $0x148] sm:$0xff] }
 0x16a   :  { %v783_v26 = vpack.c.bf16 %v394_v15, %v393_v40  ;;  %v452_v40 = vld [vmem:[#allocation7 + $0x1e8] sm:$0xff]  ;;  %v403_v15 = vld [vmem:[#allocation7 + $0x60] sm:$0xff] }
 0x16b   :  { %v100_v6 = vmul.f32 %v634_v60, %v91_v61  ;;  %v417_v61 = vld [vmem:[#allocation7 + $0xd0] sm:$0xff] }
 0x16c   :  { %v853_v10 = vpop.eup %852 }
 0x16d   :  { %v109_v11 = vadd.f32 %v635_v62, %v100_v6  ;;  %v92_v12 = vmul.f32 %v853_v10, %v1067_v44  ;;  %v829_v6 = vpack.c.bf16 %v450_v3, %v449_v63  ;;  %v831_v10 = vpack.c.bf16 %v434_v9, %v433_v8 }
 0x16f   :  { %262 = vmatmul.mubr.f32.vlgmr.msra.gmra.mrb[0].mxu0 %v109_v11  ;;  %339 = vmatmul.mubr.f32.vlgmr.msra.gmra.mrb[0].mxu1 %v109_v11  ;;  %v101_v21 = vmul.f32 %v634_v60, %v92_v12  ;;  %v827_v60 = vpack.c.bf16 %v432_v59, %v431_v58  ;;  %v419_v11 = vld [vmem:[#allocation7 + $0xe0] sm:$0xff]  ;;  %v420_v12 = vld [vmem:[#allocation7 + $0xe8] sm:$0xff] }
 0x170   :  { %267 = vmatprep.mubr.f32.mxu0 %v971_v24  ;;  %344 = vmatprep.mubr.f32.mxu1 %v971_v24  ;;  %v413_v24 = vld [vmem:[#allocation7 + $0xb0] sm:$0xff] }
 0x171   :  { %v110_v44 = vadd.f32 %v635_v62, %v101_v21  ;;  %780 = vmatpush3.bf16.msra.mxu0 %v779_v13  ;;  %812 = vmatpush3.bf16.msra.mxu1 %v811_v14  ;;  %v789_v38 = vpack.c.bf16 %v414_v36, %v413_v24  ;;  %v418_v62 = vld [vmem:[#allocation7 + $0xd8] sm:$0xff]  ;;  %v451_v13 = vld [vmem:[#allocation7 + $0x1e0] sm:$0xff]  ;;  %v801_v14 = vpack.c.bf16 %v420_v12, %v419_v11 }
 0x172   :  { %782 = vmatprep.subr.bf16.mxu0 %v781_v16  ;;  %814 = vmatprep.subr.bf16.mxu1 %v813_v17  ;;  %v797_v2 = vpack.c.bf16 %v418_v62, %v417_v61  ;;  %v404_v16 = vld [vmem:[#allocation7 + $0x68] sm:$0xff]  ;;  %v833_v17 = vpack.c.bf16 %v452_v40, %v451_v13  ;;  %v835_v21 = vpack.c.bf16 %v436_v20, %v435_v19 }
 0x173   :  { %268 = vmatmul.mubr.f32.gmra.mrb[2].mxu0 %v110_v44  ;;  %345 = vmatmul.mubr.f32.gmra.mrb[2].mxu1 %v110_v44  ;;  %v803_v18 = vpack.c.bf16 %v404_v16, %v403_v15  ;;  %v805_v44 = vpack.c.bf16 %v422_v23, %v421_v22 }
 0x175   :  { %784 = vmatpush3.bf16.msra.mxu0 %v783_v26  ;;  %816 = vmatpush3.bf16.msra.mxu1 %v815_v27  ;;  %v454_v26 = vld [vmem:[#allocation7 + $0x1f8] sm:$0xff]  ;;  %v405_v27 = vld [vmem:[#allocation7 + $0x70] sm:$0xff] }
 0x176   :  { %786 = vmatprep.subr.bf16.mxu0 %v785_v29  ;;  %818 = vmatprep.subr.bf16.mxu1 %v817_v30  ;;  %v837_v29 = vpack.c.bf16 %v454_v26, %v453_v25  ;;  %v807_v30 = vpack.c.bf16 %v406_v28, %v405_v27 }
 0x179   :  { %788 = vmatpush3.bf16.msra.mxu0 %v787_v34  ;;  %820 = vmatpush3.bf16.msra.mxu1 %v819_v35  ;;  %v177_v34 = vlaneseq }
 0x17a   :  { %790 = vmatprep.subr.bf16.mxu0 %v789_v38  ;;  %822 = vmatprep.subr.bf16.mxu1 %v821_v43 }
 0x17b   :  { %v178_v35 = vshrl.u32 %v177_v34, 7 }
 0x17d   :  { %792 = vmatpush3.bf16.msra.mxu0 %v791_v45  ;;  %824 = vmatpush3.bf16.msra.mxu1 %v823_v48  ;;  %v179_v24 = vsub.s32 0, %v178_v35  ;;  %v187_v36 = vsub.s32 2, %v178_v35  ;;  %v183_v38 = vsub.s32 1, %v178_v35  ;;  %v191_v39 = vsub.s32 3, %v178_v35 }
 0x17e   :  { %794 = vmatprep.subr.bf16.mxu0 %v793_v52  ;;  %826 = vmatprep.subr.bf16.mxu1 %v825_v56 }
 0x17f   :  { %v180_v41 = vrot.slane %v175_v37, %v179_v24  ;;  %v188_v42 = vrot.slane %v175_v37, %v187_v36  ;;  %v184_v43 = vrot.slane %v175_v37, %v183_v38  ;;  %v192_v45 = vrot.slane %v175_v37, %v191_v39 }
 0x181   :  { %796 = vmatpush3.bf16.msra.mxu0 %v795_v57  ;;  %828 = vmatpush3.bf16.msra.mxu1 %v827_v60 }
 0x182   :  { %798 = vmatprep.subr.bf16.mxu0 %v797_v2  ;;  %830 = vmatprep.subr.bf16.mxu1 %v829_v6 }
 0x185   :  { %800 = vmatpush3.bf16.msra.mxu0 %v799_v7  ;;  %832 = vmatpush3.bf16.msra.mxu1 %v831_v10 }
 0x186   :  { %802 = vmatprep.subr.bf16.mxu0 %v801_v14  ;;  %834 = vmatprep.subr.bf16.mxu1 %v833_v17 }
 0x189   :  { %804 = vmatpush3.bf16.msra.mxu0 %v803_v18  ;;  %836 = vmatpush3.bf16.msra.mxu1 %v835_v21 }
 0x18a   :  { %806 = vmatprep.subr.bf16.mxu0 %v805_v44  ;;  %838 = vmatprep.subr.bf16.mxu1 %v837_v29 }
 0x18d   :  { %808 = vmatpush3.bf16.msra.mxu0 %v807_v30  ;;  %840 = vmatpush3.bf16.msra.mxu1 %v839_v33 }
 0x242   :  { %v263_v46 = vpop.f32.mrb[0].mxu0  ;;  %v340_v47 = vpop.f32.mrb[0].mxu1 }
 0x243   :  { %v264_v48 = vadd.f32 %v263_v46, %v180_v41  ;;  %v341_v49 = vadd.f32 %v340_v47, %v188_v42  ;;  %v265_v50 = vpop.f32.mrb[1].mxu0  ;;  %v342_v51 = vpop.f32.mrb[1].mxu1 }
 0x244   :  { %v266_v52 = vadd.f32 %v265_v50, %v184_v43  ;;  %v343_v53 = vadd.f32 %v342_v51, %v192_v45 }
 0x245   :  { %v359_v54 = vmul.f32 0.70710677, %v264_v48  ;;  %v361_v55 = vmul.f32 0.70710677, %v341_v49  ;;  %v351_v15 = vmul.f32 0.5, %v264_v48  ;;  %v353_v19 = vmul.f32 0.5, %v341_v49 }
 0x246   :  { %v360_v56 = vmul.f32 0.70710677, %v266_v52  ;;  %v362_v57 = vmul.f32 0.70710677, %v343_v53  ;;  %v269_v58 = vpop.f32.mrb[2].mxu0  ;;  %v346_v59 = vpop.f32.mrb[2].mxu1 }
 0x247   :  { %854 = verf.f32 %v359_v54  ;;  %v270_v60 = vadd.f32 %v269_v58, %v180_v41  ;;  %v347_v61 = vadd.f32 %v346_v59, %v188_v42  ;;  %v271_v62 = vpop.f32.mrb[3].mxu0  ;;  %v348_v63 = vpop.f32.mrb[3].mxu1  ;;  %v352_v14 = vmul.f32 0.5, %v266_v52  ;;  %v636_v41 = vld [vmem:[%s1112_s6] ss:$0 sm:$0xff]  ;;  %s936_s6 = scalar_lea.vmem %s622_s21, 256 }
 0x248   :  { %856 = verf.f32 %v361_v55  ;;  %v272_v2 = vadd.f32 %v271_v62, %v184_v43  ;;  %v349_v3 = vadd.f32 %v348_v63, %v192_v45  ;;  %v354_v16 = vmul.f32 0.5, %v343_v53  ;;  %p937_p10 = scmp.ne.s32.totalorder %s622_s21, %s936_s6  ;;  %p942_p12 = scmp.lt.s32.totalorder %s936_s6, %s936_s6 }
 0x249   :  { %858 = verf.f32 %v360_v56  ;;  %v363_v4 = vmul.f32 0.70710677, %v270_v60  ;;  %v365_v5 = vmul.f32 0.70710677, %v347_v61  ;;  %v355_v31 = vmul.f32 0.5, %v270_v60 }
 0x24a   :  { %860 = verf.f32 %v362_v57  ;;  %v364_v6 = vmul.f32 0.70710677, %v272_v2  ;;  %v366_v7 = vmul.f32 0.70710677, %v349_v3  ;;  %v356_v29 = vmul.f32 0.5, %v272_v2  ;;  %p943_p13 = por %p942_p12, %p941_p11 }
 0x24b   :  { %862 = verf.f32 %v363_v4  ;;  %v358_v32 = vmul.f32 0.5, %v349_v3  ;;  %v357_v34 = vmul.f32 0.5, %v347_v61 }
 0x24c   :  { %864 = verf.f32 %v365_v5  ;;  %p944_p0 = pnand %p943_p13, %p937_p10 }
 0x24d   :  { %866 = verf.f32 %v364_v6 }
 0x24e   :  { %868 = verf.f32 %v366_v7 }
 0x251   :  { %v855_v8 = vpop.eup %854 }
 0x252   :  { %v857_v9 = vpop.eup %856  ;;  %v375_v11 = vadd.f32 1.0, %v855_v8 }
 0x253   :  { %v859_v10 = vpop.eup %858  ;;  %v377_v13 = vadd.f32 1.0, %v857_v9 }
 0x254   :  { %v861_v12 = vpop.eup %860  ;;  %v376_v40 = vadd.f32 1.0, %v859_v10  ;;  %v383_v22 = vmul.f32 %v375_v11, %v351_v15 }
 0x255   :  { %v378_v17 = vadd.f32 1.0, %v861_v12  ;;  %v863_v18 = vpop.eup %862  ;;  %v385_v44 = vmul.f32 %v377_v13, %v353_v19 }
 0x256   :  { %v384_v20 = vmul.f32 %v376_v40, %v352_v14  ;;  %v865_v21 = vpop.eup %864  ;;  %v379_v26 = vadd.f32 1.0, %v863_v18 }
 0x257   :  { %v386_v23 = vmul.f32 %v378_v17, %v354_v16  ;;  %v867_v25 = vpop.eup %866  ;;  %v381_v28 = vadd.f32 1.0, %v865_v21 }
 0x258   :  { %526 = vmatprep.mubr.f32.mxu0 %v384_v20  ;;  %v869_v27 = vpop.eup %868  ;;  %v380_v30 = vadd.f32 1.0, %v867_v25  ;;  %v387_v36 = vmul.f32 %v379_v26, %v355_v31 }
 0x259   :  { %601 = vmatprep.mubr.f32.mxu1 %v386_v23  ;;  %527 = vmatmul.mubr.f32.vlgmr.msra.gmra.mrb[4].mxu0 %v383_v22  ;;  %v382_v33 = vadd.f32 1.0, %v869_v27  ;;  %v389_v37 = vmul.f32 %v381_v28, %v357_v34 }
 0x25a   :  { %602 = vmatmul.mubr.f32.vlgmr.msra.gmra.mrb[4].mxu1 %v385_v44  ;;  %v388_v35 = vmul.f32 %v380_v30, %v356_v29 }
 0x25b   :  { %v390_v24 = vmul.f32 %v382_v33, %v358_v32 }
 0x25c   :  { %531 = vmatprep.mubr.f32.mxu0 %v388_v35 }
 0x25d   :  { %606 = vmatprep.mubr.f32.mxu1 %v390_v24  ;;  %532 = vmatmul.mubr.f32.gmra.mrb[6].mxu0 %v387_v36 }
 0x25e   :  { %607 = vmatmul.mubr.f32.gmra.mrb[6].mxu1 %v389_v37 }
 0x32c   :  { %v669_v38 = vpop.f32.mrb[4].mxu0 }
 0x32d   :  { %v707_v39 = vpop.f32.mrb[4].mxu1  ;;  %v670_v42 = vpop.f32.mrb[5].mxu0 }
 0x32e   :  { %v671_v43 = vadd.f32 %v670_v42, %v669_v38  ;;  %v708_v45 = vpop.f32.mrb[5].mxu1 }
 0x32f   :  { %v709_v46 = vadd.f32 %v708_v45, %v707_v39 }
 0x330   :  { %v529_v47 = vadd.f32 %v671_v43, %v636_v41  ;;  %v672_v48 = vpop.f32.mrb[6].mxu0 }
 0x331   :  { %v710_v50 = vpop.f32.mrb[6].mxu1  ;;  %v673_v51 = vpop.f32.mrb[7].mxu0 }
 0x332   :  { %v604_v49 = vadd.f32 %v709_v46, %v529_v47  ;;  %v674_v52 = vadd.f32 %v673_v51, %v672_v48  ;;  %v711_v53 = vpop.f32.mrb[7].mxu1 }
 0x333   :  { %v712_v55 = vadd.f32 %v711_v53, %v710_v50 }
 0x334   :  { %v612_v54 = vadd.f32 %v604_v49, %v1055_v0  ;;  %v534_v56 = vadd.f32 %v674_v52, %v636_v41 }
 0x336   :  { %614 = vst [vmem:[#allocation8] sm:$0xff] %v612_v54  ;;  %v609_v57 = vadd.f32 %v712_v55, %v534_v56 }
 0x338   :  { %v613_v58 = vadd.f32 %v609_v57, %v1058_v1 }
 0x33a   :  { %615 = vst [vmem:[#allocation8 + $0x8] sm:$0xff] %v613_v58 }
 0x33b   :  { %947 = shalt.err (!%p944_p0)
}
 0x33c   :  { %s948_s24 = scalar_lea.hbm %s1113_s7, 256 }
 0x33d   :  { %p949_p1 = scmp.ne.s32.totalorder %s1113_s7, %s948_s24  ;;  %p952_p2 = scmp.lt.u32.totalorder %s948_s24, %s1113_s7 }
 0x33f   :  { %p954_p3 = pnand %p952_p2, %p949_p1 }
 0x341   :  { %957 = shalt.err (!%p954_p3)
}
 0x342   :  { %627 = dma.vmem_to_hbm [thread:$0]  %s622_s21, 256, %s1113_s7, [#allocation4], %s968_s3, %s968_s3, %s969_s25  }
 0x343   :  { %962 = dma.done.wait [#allocation4], 256  }
 0x344   :  { %963 = vsyncadd [#allocation4], 4294967040 }
 0x345   :  { %631 = vsyncpa [#allocation3], 1 }
 0x346   :  { %632 = vsyncpa [#allocation6], 1 }
 0x347   :  { %633 = vsyncpa [#allocation4], 1 }

// kernel: tpu_custom_call.1
= control target key start
LH: loop header
LB: loop body
LE: loop exit
PB: predicated region body
PF: predicated region fallthrough
CT: control target
= control target key end

     0   :  { %12 = vsyncpa [#allocation3], 0  ;;  %s1106_s0 = inlined_call_operand.hbm [shape: f32[16,128], index: 0, kind: input, shape index: {}]   ;;  %s1107_s1 = inlined_call_operand.vmem [shape: f32[1,128], index: 1, kind: input, shape index: {}]   ;;  %s1108_s2 = inlined_call_operand.vmem [shape: f32[1,128], index: 2, kind: input, shape index: {}]   ;;  %s1109_s3 = inlined_call_operand.hbm [shape: f32[128,512], index: 3, kind: input, shape index: {}]   ;;  %s1110_s4 = inlined_call_operand.vmem [shape: f32[1,512], index: 4, kind: input, shape index: {}]   ;;  %s1111_s5 = inlined_call_operand.hbm [shape: f32[512,128], index: 5, kind: input, shape index: {}]   ;;  %s1112_s6 = inlined_call_operand.vmem [shape: f32[1,128], index: 6, kind: input, shape index: {}]   ;;  %s1113_s7 = inlined_call_operand.hbm [shape: f32[16,128], index: 7, kind: output, shape index: {}]  }
   0x1   :  { %13 = vsyncpa [#allocation6], 0 }
   0x2   :  { %14 = vsyncpa [#allocation4], 0  ;;  %s964_s24 = smov [#allocation5]   ;;  %s870_s28 = scalar_lea.hbm %s1109_s3, 8192 }
   0x3   :  { %s36_s25 = sshll.u32 %s964_s24, 4  ;;  %p871_p0 = scmp.ne.s32.totalorder %s1109_s3, %s870_s28  ;;  %s37_s25 = int_to_ptr.vmem [resolvable:$true] %s36_s25 }
   0x4   :  { %p874_p1 = scmp.lt.u32.totalorder %s870_s28, %s1109_s3 }
   0x6   :  { %p876_p2 = pnand %p874_p1, %p871_p0 }
   0x8   :  { %879 = shalt.err (!%p876_p2)
}
   0x9   :  { %s880_s10 = scalar_lea.vmem %s37_s25, 8192  ;;  %p885_p4 = scmp.lt.s32.totalorder %s37_s25, %s37_s25 }
   0xa   :  { %p881_p3 = scmp.ne.s32.totalorder %s37_s25, %s880_s10  ;;  %p886_p5 = scmp.lt.s32.totalorder %s880_s10, %s880_s10 }
   0xc   :  { %p887_p6 = por %p886_p5, %p885_p4 }
   0xe   :  { %p888_p7 = pnand %p887_p6, %p881_p3 }
  0x10   :  { %891 = shalt.err (!%p888_p7)
}
  0x11   :  { %s965_s11 = smov 512   ;;  %s966_s12 = smov 32  }
  0x12   :  { %42 = dma.hbm_to_vmem [thread:$0]  %s1109_s3, 8192, %s37_s25, [#allocation6], %s965_s11, %s965_s11, %s966_s12  }
  0x13   :  { %s967_s15 = smov [#allocation2]   ;;  %s892_s19 = scalar_lea.hbm %s1106_s0, 256 }
  0x14   :  { %s20_s16 = sshll.u32 %s967_s15, 4  ;;  %p893_p8 = scmp.ne.s32.totalorder %s1106_s0, %s892_s19  ;;  %s21_s16 = int_to_ptr.vmem [resolvable:$true] %s20_s16 }
  0x15   :  { %p896_p9 = scmp.lt.u32.totalorder %s892_s19, %s1106_s0 }
  0x17   :  { %p898_p10 = pnand %p896_p9, %p893_p8 }
  0x19   :  { %901 = shalt.err (!%p898_p10)
}
  0x1a   :  { %s902_s24 = scalar_lea.vmem %s21_s16, 256  ;;  %p907_p12 = scmp.lt.s32.totalorder %s21_s16, %s21_s16 }
  0x1b   :  { %p903_p11 = scmp.ne.s32.totalorder %s21_s16, %s902_s24  ;;  %p908_p13 = scmp.lt.s32.totalorder %s902_s24, %s902_s24 }
  0x1d   :  { %p909_p0 = por %p908_p13, %p907_p12 }
  0x1f   :  { %p910_p1 = pnand %p909_p0, %p903_p11 }
  0x21   :  { %913 = shalt.err (!%p910_p1)
}
  0x22   :  { %s968_s3 = smov 128   ;;  %s969_s25 = smov 8  }
  0x23   :  { %26 = dma.hbm_to_vmem [thread:$0]  %s1106_s0, 256, %s21_s16, [#allocation3], %s968_s3, %s968_s3, %s969_s25  }
  0x24   :  { %s970_s28 = smov [#allocation7]   ;;  %s914_s9 = scalar_lea.hbm %s1111_s5, 8192 }
  0x25   :  { %s50_s29 = sshll.u32 %s970_s28, 4  ;;  %p915_p2 = scmp.ne.s32.totalorder %s1111_s5, %s914_s9  ;;  %s51_s29 = int_to_ptr.vmem [resolvable:$true] %s50_s29 }
  0x26   :  { %p918_p3 = scmp.lt.u32.totalorder %s914_s9, %s1111_s5 }
  0x28   :  { %p920_p4 = pnand %p918_p3, %p915_p2 }
  0x2a   :  { %923 = shalt.err (!%p920_p4)
}
  0x2b   :  { %s924_s14 = scalar_lea.vmem %s51_s29, 8192  ;;  %p929_p6 = scmp.lt.s32.totalorder %s51_s29, %s51_s29 }
  0x2c   :  { %p925_p5 = scmp.ne.s32.totalorder %s51_s29, %s924_s14  ;;  %p930_p7 = scmp.lt.s32.totalorder %s924_s14, %s924_s14 }
  0x2e   :  { %p931_p8 = por %p930_p7, %p929_p6 }
  0x30   :  { %p932_p9 = pnand %p931_p8, %p925_p5 }
  0x32   :  { %935 = shalt.err (!%p932_p9)
}
  0x33   :  { %56 = dma.hbm_to_vmem [thread:$0]  %s1111_s5, 8192, %s51_s29, [#allocation6], %s968_s3, %s968_s3, %s969_s25  }
  0x34   :  { %958 = dma.done.wait [#allocation3], 256  }
  0x35   :  { %959 = vsyncadd [#allocation3], 4294967040 }
  0x36   :  { %960 = dma.done.wait [#allocation6], 16384  }
  0x37   :  { %961 = vsyncadd [#allocation6], 4294950912  ;;  %v1055_v0 = vld [vmem:[#allocation2] sm:$0xff]  ;;  %v1058_v1 = vld [vmem:[#allocation2 + $0x8] sm:$0xff]  ;;  %s972_s20 = smov [#allocation8]  }
  0x38   :  { %70 = vadd.xlane.f32.xlu0 %v1055_v0  ;;  %v112_v2 = vld [vmem:[#allocation5 + $0x8] sm:$0xff]  ;;  %v114_v4 = vld [vmem:[#allocation5 + $0x18] sm:$0xff]  ;;  %v111_v7 = vld [vmem:[#allocation5] sm:$0xff]  ;;  %s621_s21 = sshll.u32 %s972_s20, 4  ;;  %s622_s21 = int_to_ptr.vmem [resolvable:$true] %s621_s21 }
  0x39   :  { %v116_v3 = vld [vmem:[#allocation5 + $0x28] sm:$0xff]  ;;  %v118_v6 = vld [vmem:[#allocation5 + $0x38] sm:$0xff]  ;;  %v115_v8 = vld [vmem:[#allocation5 + $0x20] sm:$0xff]  ;;  %p941_p11 = scmp.lt.s32.totalorder %s622_s21, %s622_s21 }
  0x3a   :  { %v713_v5 = vpack.c.bf16 %v116_v3, %v112_v2  ;;  %v745_v9 = vpack.c.bf16 %v118_v6, %v114_v4  ;;  %v715_v10 = vpack.c.bf16 %v115_v8, %v111_v7  ;;  %v113_v11 = vld [vmem:[#allocation5 + $0x10] sm:$0xff]  ;;  %v120_v13 = vld [vmem:[#allocation5 + $0x48] sm:$0xff]  ;;  %v122_v16 = vld [vmem:[#allocation5 + $0x58] sm:$0xff] }
  0x3b   :  { %v117_v12 = vld [vmem:[#allocation5 + $0x30] sm:$0xff]  ;;  %v124_v15 = vld [vmem:[#allocation5 + $0x68] sm:$0xff]  ;;  %v126_v17 = vld [vmem:[#allocation5 + $0x78] sm:$0xff] }
  0x3c   :  { %72 = vadd.xlane.f32.xlu0 %v1058_v1  ;;  %714 = vmatprep.subr.bf16.mxu0 %v713_v5  ;;  %v747_v14 = vpack.c.bf16 %v117_v12, %v113_v11  ;;  %v717_v18 = vpack.c.bf16 %v124_v15, %v120_v13  ;;  %v749_v19 = vpack.c.bf16 %v126_v17, %v122_v16  ;;  %v119_v20 = vld [vmem:[#allocation5 + $0x40] sm:$0xff]  ;;  %v121_v22 = vld [vmem:[#allocation5 + $0x50] sm:$0xff]  ;;  %v128_v25 = vld [vmem:[#allocation5 + $0x88] sm:$0xff] }
  0x3d   :  { %746 = vmatprep.subr.bf16.mxu1 %v745_v9  ;;  %716 = vmatpush1.bf16.msra.mxu0 %v715_v10  ;;  %v123_v21 = vld [vmem:[#allocation5 + $0x60] sm:$0xff]  ;;  %v125_v24 = vld [vmem:[#allocation5 + $0x70] sm:$0xff]  ;;  %v132_v26 = vld [vmem:[#allocation5 + $0xa8] sm:$0xff] }
  0x3e   :  { %748 = vmatpush1.bf16.msra.mxu1 %v747_v14  ;;  %v719_v23 = vpack.c.bf16 %v123_v21, %v119_v20  ;;  %718 = vmatprep.subr.bf16.mxu0 %v717_v18  ;;  %v751_v27 = vpack.c.bf16 %v125_v24, %v121_v22  ;;  %v721_v28 = vpack.c.bf16 %v132_v26, %v128_v25  ;;  %v130_v29 = vld [vmem:[#allocation5 + $0x98] sm:$0xff]  ;;  %v127_v31 = vld [vmem:[#allocation5 + $0x80] sm:$0xff]  ;;  %v129_v34 = vld [vmem:[#allocation5 + $0x90] sm:$0xff]  ;;  %v971_v24 = vmov 0.0  }
  0x3f   :  { %750 = vmatprep.subr.bf16.mxu1 %v749_v19  ;;  %v134_v30 = vld [vmem:[#allocation5 + $0xb8] sm:$0xff]  ;;  %v131_v33 = vld [vmem:[#allocation5 + $0xa0] sm:$0xff]  ;;  %v133_v35 = vld [vmem:[#allocation5 + $0xb0] sm:$0xff]  ;;  %261 = vmatprep.mubr.f32.mxu0 %v971_v24 }
  0x40   :  { %v753_v32 = vpack.c.bf16 %v134_v30, %v130_v29  ;;  %v723_v36 = vpack.c.bf16 %v131_v33, %v127_v31  ;;  %v755_v37 = vpack.c.bf16 %v133_v35, %v129_v34  ;;  %v136_v46 = vld [vmem:[#allocation5 + $0xc8] sm:$0xff]  ;;  %v138_v48 = vld [vmem:[#allocation5 + $0xd8] sm:$0xff]  ;;  %v135_v51 = vld [vmem:[#allocation5 + $0xc0] sm:$0xff]  ;;  %338 = vmatprep.mubr.f32.mxu1 %v971_v24 }
  0x41   :  { %720 = vmatpush1.bf16.msra.mxu0 %v719_v23  ;;  %v140_v47 = vld [vmem:[#allocation5 + $0xe8] sm:$0xff]  ;;  %v142_v50 = vld [vmem:[#allocation5 + $0xf8] sm:$0xff]  ;;  %v139_v52 = vld [vmem:[#allocation5 + $0xe0] sm:$0xff] }
  0x42   :  { %752 = vmatpush1.bf16.msra.mxu1 %v751_v27  ;;  %722 = vmatprep.subr.bf16.mxu0 %v721_v28  ;;  %v725_v49 = vpack.c.bf16 %v140_v47, %v136_v46  ;;  %v757_v53 = vpack.c.bf16 %v142_v50, %v138_v48  ;;  %v727_v54 = vpack.c.bf16 %v139_v52, %v135_v51  ;;  %v137_v55 = vld [vmem:[#allocation5 + $0xd0] sm:$0xff]  ;;  %v144_v58 = vld [vmem:[#allocation5 + $0x108] sm:$0xff]  ;;  %v146_v60 = vld [vmem:[#allocation5 + $0x118] sm:$0xff] }
  0x43   :  { %754 = vmatprep.subr.bf16.mxu1 %v753_v32  ;;  %v141_v56 = vld [vmem:[#allocation5 + $0xf0] sm:$0xff]  ;;  %v148_v59 = vld [vmem:[#allocation5 + $0x128] sm:$0xff]  ;;  %v150_v62 = vld [vmem:[#allocation5 + $0x138] sm:$0xff] }
  0x44   :  { %v759_v57 = vpack.c.bf16 %v141_v56, %v137_v55  ;;  %v729_v61 = vpack.c.bf16 %v148_v59, %v144_v58  ;;  %v143_v63 = vld [vmem:[#allocation5 + $0x100] sm:$0xff]  ;;  %v761_v3 = vpack.c.bf16 %v150_v62, %v146_v60  ;;  %v145_v5 = vld [vmem:[#allocation5 + $0x110] sm:$0xff]  ;;  %v152_v8 = vld [vmem:[#allocation5 + $0x148] sm:$0xff] }
  0x45   :  { %724 = vmatpush1.bf16.msra.mxu0 %v723_v36  ;;  %v147_v2 = vld [vmem:[#allocation5 + $0x120] sm:$0xff]  ;;  %v149_v6 = vld [vmem:[#allocation5 + $0x130] sm:$0xff]  ;;  %v156_v9 = vld [vmem:[#allocation5 + $0x168] sm:$0xff] }
  0x46   :  { %756 = vmatpush1.bf16.msra.mxu1 %v755_v37  ;;  %726 = vmatprep.subr.bf16.mxu0 %v725_v49  ;;  %v731_v4 = vpack.c.bf16 %v147_v2, %v143_v63  ;;  %v763_v7 = vpack.c.bf16 %v149_v6, %v145_v5  ;;  %v154_v10 = vld [vmem:[#allocation5 + $0x158] sm:$0xff]  ;;  %v733_v11 = vpack.c.bf16 %v156_v9, %v152_v8  ;;  %v151_v13 = vld [vmem:[#allocation5 + $0x140] sm:$0xff]  ;;  %v153_v17 = vld [vmem:[#allocation5 + $0x150] sm:$0xff] }
  0x47   :  { %758 = vmatprep.subr.bf16.mxu1 %v757_v53  ;;  %v158_v12 = vld [vmem:[#allocation5 + $0x178] sm:$0xff]  ;;  %v155_v14 = vld [vmem:[#allocation5 + $0x160] sm:$0xff]  ;;  %v157_v18 = vld [vmem:[#allocation5 + $0x170] sm:$0xff] }
  0x48   :  { %v765_v15 = vpack.c.bf16 %v158_v12, %v154_v10  ;;  %v735_v16 = vpack.c.bf16 %v155_v14, %v151_v13  ;;  %v160_v19 = vld [vmem:[#allocation5 + $0x188] sm:$0xff]  ;;  %v767_v20 = vpack.c.bf16 %v157_v18, %v153_v17  ;;  %v162_v22 = vld [vmem:[#allocation5 + $0x198] sm:$0xff]  ;;  %v159_v27 = vld [vmem:[#allocation5 + $0x180] sm:$0xff] }
  0x49   :  { %728 = vmatpush1.bf16.msra.mxu0 %v727_v54  ;;  %v164_v21 = vld [vmem:[#allocation5 + $0x1a8] sm:$0xff]  ;;  %v166_v23 = vld [vmem:[#allocation5 + $0x1b8] sm:$0xff]  ;;  %v163_v28 = vld [vmem:[#allocation5 + $0x1a0] sm:$0xff] }
  0x4a   :  { %760 = vmatpush1.bf16.msra.mxu1 %v759_v57  ;;  %730 = vmatprep.subr.bf16.mxu0 %v729_v61  ;;  %v737_v25 = vpack.c.bf16 %v164_v21, %v160_v19  ;;  %v769_v26 = vpack.c.bf16 %v166_v23, %v162_v22  ;;  %v161_v29 = vld [vmem:[#allocation5 + $0x190] sm:$0xff]  ;;  %v739_v30 = vpack.c.bf16 %v163_v28, %v159_v27  ;;  %v168_v32 = vld [vmem:[#allocation5 + $0x1c8] sm:$0xff]  ;;  %v170_v36 = vld [vmem:[#allocation5 + $0x1d8] sm:$0xff] }
  0x4b   :  { %762 = vmatprep.subr.bf16.mxu1 %v761_v3  ;;  %v165_v31 = vld [vmem:[#allocation5 + $0x1b0] sm:$0xff]  ;;  %v172_v33 = vld [vmem:[#allocation5 + $0x1e8] sm:$0xff]  ;;  %v174_v37 = vld [vmem:[#allocation5 + $0x1f8] sm:$0xff] }
  0x4c   :  { %v771_v34 = vpack.c.bf16 %v165_v31, %v161_v29  ;;  %v741_v35 = vpack.c.bf16 %v172_v33, %v168_v32  ;;  %v407_v47 = vld [vmem:[#allocation7 + $0x80] sm:$0xff]  ;;  %v408_v48 = vld [vmem:[#allocation7 + $0x88] sm:$0xff]  ;;  %v634_v60 = vld [vmem:[%s1107_s1] ss:$0 sm:$0xff] }
  0x4d   :  { %732 = vmatpush1.bf16.msra.mxu0 %v731_v4  ;;  %v439_v49 = vld [vmem:[#allocation7 + $0x180] sm:$0xff]  ;;  %v777_v50 = vpack.c.bf16 %v408_v48, %v407_v47  ;;  %v440_v51 = vld [vmem:[#allocation7 + $0x188] sm:$0xff]  ;;  %v635_v62 = vld [vmem:[%s1108_s2] ss:$0 sm:$0xff] }
  0x4e   :  { %764 = vmatpush1.bf16.msra.mxu1 %v763_v7  ;;  %734 = vmatprep.subr.bf16.mxu0 %v733_v11  ;;  %v809_v52 = vpack.c.bf16 %v440_v51, %v439_v49  ;;  %v391_v63 = vld [vmem:[#allocation7] sm:$0xff]  ;;  %v392_v2 = vld [vmem:[#allocation7 + $0x8] sm:$0xff]  ;;  %v409_v5 = vld [vmem:[#allocation7 + $0x90] sm:$0xff] }
  0x4f   :  { %766 = vmatprep.subr.bf16.mxu1 %v765_v15  ;;  %v423_v3 = vld [vmem:[#allocation7 + $0x100] sm:$0xff]  ;;  %v424_v4 = vld [vmem:[#allocation7 + $0x108] sm:$0xff]  ;;  %v410_v7 = vld [vmem:[#allocation7 + $0x98] sm:$0xff]  ;;  %v779_v13 = vpack.c.bf16 %v392_v2, %v391_v63 }
  0x50   :  { %v441_v8 = vld [vmem:[#allocation7 + $0x190] sm:$0xff]  ;;  %v442_v9 = vld [vmem:[#allocation7 + $0x198] sm:$0xff]  ;;  %v811_v14 = vpack.c.bf16 %v424_v4, %v423_v3  ;;  %v412_v22 = vld [vmem:[#allocation7 + $0xa8] sm:$0xff] }
  0x51   :  { %736 = vmatpush1.bf16.msra.mxu0 %v735_v16  ;;  %v394_v15 = vld [vmem:[#allocation7 + $0x18] sm:$0xff]  ;;  %v781_v16 = vpack.c.bf16 %v410_v7, %v409_v5  ;;  %v813_v17 = vpack.c.bf16 %v442_v9, %v441_v8  ;;  %v425_v18 = vld [vmem:[#allocation7 + $0x110] sm:$0xff]  ;;  %v443_v23 = vld [vmem:[#allocation7 + $0x1a0] sm:$0xff] }
  0x52   :  { %768 = vmatpush1.bf16.msra.mxu1 %v767_v20  ;;  %738 = vmatprep.subr.bf16.mxu0 %v737_v25  ;;  %v426_v19 = vld [vmem:[#allocation7 + $0x118] sm:$0xff]  ;;  %v411_v20 = vld [vmem:[#allocation7 + $0xa0] sm:$0xff]  ;;  %v444_v25 = vld [vmem:[#allocation7 + $0x1a8] sm:$0xff] }
  0x53   :  { %770 = vmatprep.subr.bf16.mxu1 %v769_v26  ;;  %v815_v27 = vpack.c.bf16 %v426_v19, %v425_v18  ;;  %v395_v28 = vld [vmem:[#allocation7 + $0x20] sm:$0xff]  ;;  %v785_v29 = vpack.c.bf16 %v412_v22, %v411_v20  ;;  %v396_v31 = vld [vmem:[#allocation7 + $0x28] sm:$0xff]  ;;  %v430_v47 = vld [vmem:[#allocation7 + $0x138] sm:$0xff] }
  0x54   :  { %v427_v32 = vld [vmem:[#allocation7 + $0x120] sm:$0xff]  ;;  %v428_v33 = vld [vmem:[#allocation7 + $0x128] sm:$0xff]  ;;  %v449_v63 = vld [vmem:[#allocation7 + $0x1d0] sm:$0xff] }
  0x55   :  { %740 = vmatpush1.bf16.msra.mxu0 %v739_v30  ;;  %v817_v30 = vpack.c.bf16 %v444_v25, %v443_v23  ;;  %v415_v49 = vld [vmem:[#allocation7 + $0xc0] sm:$0xff]  ;;  %v450_v3 = vld [vmem:[#allocation7 + $0x1d8] sm:$0xff]  ;;  %v401_v4 = vld [vmem:[#allocation7 + $0x50] sm:$0xff] }
  0x56   :  { %772 = vmatpush1.bf16.msra.mxu1 %v771_v34  ;;  %742 = vmatprep.subr.bf16.mxu0 %v741_v35  ;;  %v787_v34 = vpack.c.bf16 %v396_v31, %v395_v28  ;;  %v819_v35 = vpack.c.bf16 %v428_v33, %v427_v32  ;;  %v447_v51 = vld [vmem:[#allocation7 + $0x1c0] sm:$0xff]  ;;  %v402_v5 = vld [vmem:[#allocation7 + $0x58] sm:$0xff]  ;;  %v433_v8 = vld [vmem:[#allocation7 + $0x150] sm:$0xff] }
  0x57   :  { %v799_v7 = vpack.c.bf16 %v402_v5, %v401_v4  ;;  %v434_v9 = vld [vmem:[#allocation7 + $0x158] sm:$0xff]  ;;  %v435_v19 = vld [vmem:[#allocation7 + $0x160] sm:$0xff]  ;;  %v436_v20 = vld [vmem:[#allocation7 + $0x168] sm:$0xff] }
  0x58   :  { %v421_v22 = vld [vmem:[#allocation7 + $0xf0] sm:$0xff]  ;;  %v422_v23 = vld [vmem:[#allocation7 + $0xf8] sm:$0xff] }
  0x59   :  { %v453_v25 = vld [vmem:[#allocation7 + $0x1f0] sm:$0xff]  ;;  %v406_v28 = vld [vmem:[#allocation7 + $0x78] sm:$0xff] }
  0x5a   :  { %v437_v31 = vld [vmem:[#allocation7 + $0x170] sm:$0xff]  ;;  %v438_v32 = vld [vmem:[#allocation7 + $0x178] sm:$0xff] }
  0x5b   :  { %v839_v33 = vpack.c.bf16 %v438_v32, %v437_v31 }
  0xc5   :  { %v71_v38 = vpop.xlane.xlu0 %70 }
  0xc6   :  { %v75_v39 = vmul.f32 0.0078125, %v71_v38  ;;  %v167_v38 = vld [vmem:[#allocation5 + $0x1c0] sm:$0xff] }
  0xc8   :  { %v1062_v40 = vsub.f32 %v1055_v0, %v75_v39  ;;  %v773_v39 = vpack.c.bf16 %v174_v37, %v170_v36  ;;  %v414_v36 = vld [vmem:[#allocation7 + $0xb8] sm:$0xff]  ;;  %v445_v37 = vld [vmem:[#allocation7 + $0x1b0] sm:$0xff] }
  0xc9   :  { %v73_v41 = vpop.xlane.xlu0 %72 }
  0xca   :  { %v76_v42 = vmul.f32 0.0078125, %v73_v41  ;;  %v79_v43 = vmul.f32 %v1062_v40, %v1062_v40  ;;  %v171_v41 = vld [vmem:[#allocation5 + $0x1e0] sm:$0xff]  ;;  %774 = vmatprep.subr.bf16.mxu1 %v773_v39  ;;  %v446_v39 = vld [vmem:[#allocation7 + $0x1b8] sm:$0xff] }
  0xcc   :  { %v1067_v44 = vsub.f32 %v1058_v1, %v76_v42  ;;  %81 = vadd.xlane.f32.xlu1 %v79_v43  ;;  %v169_v42 = vld [vmem:[#allocation5 + $0x1d0] sm:$0xff] }
  0xcd   :  { %v173_v43 = vld [vmem:[#allocation5 + $0x1f0] sm:$0xff] }
  0xce   :  { %v80_v45 = vmul.f32 %v1067_v44, %v1067_v44  ;;  %v775_v46 = vpack.c.bf16 %v173_v43, %v169_v42  ;;  %v398_v42 = vld [vmem:[#allocation7 + $0x38] sm:$0xff]  ;;  %v821_v43 = vpack.c.bf16 %v446_v39, %v445_v37  ;;  %v175_v37 = vld [vmem:[%s1110_s4] sm:$0xf] }
  0xd0   :  { %83 = vadd.xlane.f32.xlu1 %v80_v45  ;;  %v743_v45 = vpack.c.bf16 %v171_v41, %v167_v38  ;;  %776 = vmatpush1.bf16.msra.mxu1 %v775_v46  ;;  %v397_v41 = vld [vmem:[#allocation7 + $0x30] sm:$0xff] }
  0xd1   :  { %810 = vmatprep.subr.bf16.mxu1 %v809_v52  ;;  %v429_v46 = vld [vmem:[#allocation7 + $0x130] sm:$0xff] }
  0xd2   :  { %744 = vmatpush1.bf16.msra.mxu0 %v743_v45  ;;  %v791_v45 = vpack.c.bf16 %v398_v42, %v397_v41  ;;  %v823_v48 = vpack.c.bf16 %v430_v47, %v429_v46 }
  0xd3   :  { %778 = vmatprep.subr.bf16.mxu0 %v777_v50  ;;  %v416_v50 = vld [vmem:[#allocation7 + $0xc8] sm:$0xff] }
  0xd4   :  { %v793_v52 = vpack.c.bf16 %v416_v50, %v415_v49 }
 0x159   :  { %v82_v53 = vpop.xlane.xlu1 %81 }
 0x15a   :  { %v85_v54 = vmul.f32 0.0078125, %v82_v53  ;;  %v448_v53 = vld [vmem:[#allocation7 + $0x1c8] sm:$0xff] }
 0x15c   :  { %v87_v55 = vadd.f32 1e-05, %v85_v54  ;;  %v399_v54 = vld [vmem:[#allocation7 + $0x40] sm:$0xff] }
 0x15d   :  { %v84_v56 = vpop.xlane.xlu1 %83 }
 0x15e   :  { %850 = vrsqrt.f32 %v87_v55  ;;  %v86_v57 = vmul.f32 0.0078125, %v84_v56  ;;  %v400_v55 = vld [vmem:[#allocation7 + $0x48] sm:$0xff]  ;;  %v825_v56 = vpack.c.bf16 %v448_v53, %v447_v51 }
 0x160   :  { %v88_v58 = vadd.f32 1e-05, %v86_v57  ;;  %v795_v57 = vpack.c.bf16 %v400_v55, %v399_v54 }
 0x162   :  { %852 = vrsqrt.f32 %v88_v58  ;;  %v431_v58 = vld [vmem:[#allocation7 + $0x140] sm:$0xff] }
 0x168   :  { %v851_v59 = vpop.eup %850 }
 0x169   :  { %v91_v61 = vmul.f32 %v851_v59, %v1062_v40  ;;  %v393_v40 = vld [vmem:[#allocation7 + $0x10] sm:$0xff]  ;;  %v432_v59 = vld [vmem:[#allocation7 + $0x148] sm:$0xff] }
 0x16a   :  { %v783_v26 = vpack.c.bf16 %v394_v15, %v393_v40  ;;  %v452_v40 = vld [vmem:[#allocation7 + $0x1e8] sm:$0xff]  ;;  %v403_v15 = vld [vmem:[#allocation7 + $0x60] sm:$0xff] }
 0x16b   :  { %v100_v6 = vmul.f32 %v634_v60, %v91_v61  ;;  %v417_v61 = vld [vmem:[#allocation7 + $0xd0] sm:$0xff] }
 0x16c   :  { %v853_v10 = vpop.eup %852 }
 0x16d   :  { %v109_v11 = vadd.f32 %v635_v62, %v100_v6  ;;  %v92_v12 = vmul.f32 %v853_v10, %v1067_v44  ;;  %v829_v6 = vpack.c.bf16 %v450_v3, %v449_v63  ;;  %v831_v10 = vpack.c.bf16 %v434_v9, %v433_v8 }
 0x16f   :  { %262 = vmatmul.mubr.f32.vlgmr.msra.gmra.mrb[0].mxu0 %v109_v11  ;;  %339 = vmatmul.mubr.f32.vlgmr.msra.gmra.mrb[0].mxu1 %v109_v11  ;;  %v101_v21 = vmul.f32 %v634_v60, %v92_v12  ;;  %v827_v60 = vpack.c.bf16 %v432_v59, %v431_v58  ;;  %v419_v11 = vld [vmem:[#allocation7 + $0xe0] sm:$0xff]  ;;  %v420_v12 = vld [vmem:[#allocation7 + $0xe8] sm:$0xff] }
 0x170   :  { %267 = vmatprep.mubr.f32.mxu0 %v971_v24  ;;  %344 = vmatprep.mubr.f32.mxu1 %v971_v24  ;;  %v413_v24 = vld [vmem:[#allocation7 + $0xb0] sm:$0xff] }
 0x171   :  { %v110_v44 = vadd.f32 %v635_v62, %v101_v21  ;;  %780 = vmatpush3.bf16.msra.mxu0 %v779_v13  ;;  %812 = vmatpush3.bf16.msra.mxu1 %v811_v14  ;;  %v789_v38 = vpack.c.bf16 %v414_v36, %v413_v24  ;;  %v418_v62 = vld [vmem:[#allocation7 + $0xd8] sm:$0xff]  ;;  %v451_v13 = vld [vmem:[#allocation7 + $0x1e0] sm:$0xff]  ;;  %v801_v14 = vpack.c.bf16 %v420_v12, %v419_v11 }
 0x172   :  { %782 = vmatprep.subr.bf16.mxu0 %v781_v16  ;;  %814 = vmatprep.subr.bf16.mxu1 %v813_v17  ;;  %v797_v2 = vpack.c.bf16 %v418_v62, %v417_v61  ;;  %v404_v16 = vld [vmem:[#allocation7 + $0x68] sm:$0xff]  ;;  %v833_v17 = vpack.c.bf16 %v452_v40, %v451_v13  ;;  %v835_v21 = vpack.c.bf16 %v436_v20, %v435_v19 }
 0x173   :  { %268 = vmatmul.mubr.f32.gmra.mrb[2].mxu0 %v110_v44  ;;  %345 = vmatmul.mubr.f32.gmra.mrb[2].mxu1 %v110_v44  ;;  %v803_v18 = vpack.c.bf16 %v404_v16, %v403_v15  ;;  %v805_v44 = vpack.c.bf16 %v422_v23, %v421_v22 }
 0x175   :  { %784 = vmatpush3.bf16.msra.mxu0 %v783_v26  ;;  %816 = vmatpush3.bf16.msra.mxu1 %v815_v27  ;;  %v454_v26 = vld [vmem:[#allocation7 + $0x1f8] sm:$0xff]  ;;  %v405_v27 = vld [vmem:[#allocation7 + $0x70] sm:$0xff] }
 0x176   :  { %786 = vmatprep.subr.bf16.mxu0 %v785_v29  ;;  %818 = vmatprep.subr.bf16.mxu1 %v817_v30  ;;  %v837_v29 = vpack.c.bf16 %v454_v26, %v453_v25  ;;  %v807_v30 = vpack.c.bf16 %v406_v28, %v405_v27 }
 0x179   :  { %788 = vmatpush3.bf16.msra.mxu0 %v787_v34  ;;  %820 = vmatpush3.bf16.msra.mxu1 %v819_v35  ;;  %v177_v34 = vlaneseq }
 0x17a   :  { %790 = vmatprep.subr.bf16.mxu0 %v789_v38  ;;  %822 = vmatprep.subr.bf16.mxu1 %v821_v43 }
 0x17b   :  { %v178_v35 = vshrl.u32 %v177_v34, 7 }
 0x17d   :  { %792 = vmatpush3.bf16.msra.mxu0 %v791_v45  ;;  %824 = vmatpush3.bf16.msra.mxu1 %v823_v48  ;;  %v179_v24 = vsub.s32 0, %v178_v35  ;;  %v187_v36 = vsub.s32 2, %v178_v35  ;;  %v183_v38 = vsub.s32 1, %v178_v35  ;;  %v191_v39 = vsub.s32 3, %v178_v35 }
 0x17e   :  { %794 = vmatprep.subr.bf16.mxu0 %v793_v52  ;;  %826 = vmatprep.subr.bf16.mxu1 %v825_v56 }
 0x17f   :  { %v180_v41 = vrot.slane %v175_v37, %v179_v24  ;;  %v188_v42 = vrot.slane %v175_v37, %v187_v36  ;;  %v184_v43 = vrot.slane %v175_v37, %v183_v38  ;;  %v192_v45 = vrot.slane %v175_v37, %v191_v39 }
 0x181   :  { %796 = vmatpush3.bf16.msra.mxu0 %v795_v57  ;;  %828 = vmatpush3.bf16.msra.mxu1 %v827_v60 }
 0x182   :  { %798 = vmatprep.subr.bf16.mxu0 %v797_v2  ;;  %830 = vmatprep.subr.bf16.mxu1 %v829_v6 }
 0x185   :  { %800 = vmatpush3.bf16.msra.mxu0 %v799_v7  ;;  %832 = vmatpush3.bf16.msra.mxu1 %v831_v10 }
 0x186   :  { %802 = vmatprep.subr.bf16.mxu0 %v801_v14  ;;  %834 = vmatprep.subr.bf16.mxu1 %v833_v17 }
 0x189   :  { %804 = vmatpush3.bf16.msra.mxu0 %v803_v18  ;;  %836 = vmatpush3.bf16.msra.mxu1 %v835_v21 }
 0x18a   :  { %806 = vmatprep.subr.bf16.mxu0 %v805_v44  ;;  %838 = vmatprep.subr.bf16.mxu1 %v837_v29 }
 0x18d   :  { %808 = vmatpush3.bf16.msra.mxu0 %v807_v30  ;;  %840 = vmatpush3.bf16.msra.mxu1 %v839_v33 }
 0x242   :  { %v263_v46 = vpop.f32.mrb[0].mxu0  ;;  %v340_v47 = vpop.f32.mrb[0].mxu1 }
 0x243   :  { %v264_v48 = vadd.f32 %v263_v46, %v180_v41  ;;  %v341_v49 = vadd.f32 %v340_v47, %v188_v42  ;;  %v265_v50 = vpop.f32.mrb[1].mxu0  ;;  %v342_v51 = vpop.f32.mrb[1].mxu1 }
 0x244   :  { %v266_v52 = vadd.f32 %v265_v50, %v184_v43  ;;  %v343_v53 = vadd.f32 %v342_v51, %v192_v45 }
 0x245   :  { %v359_v54 = vmul.f32 0.70710677, %v264_v48  ;;  %v361_v55 = vmul.f32 0.70710677, %v341_v49  ;;  %v351_v15 = vmul.f32 0.5, %v264_v48  ;;  %v353_v19 = vmul.f32 0.5, %v341_v49 }
 0x246   :  { %v360_v56 = vmul.f32 0.70710677, %v266_v52  ;;  %v362_v57 = vmul.f32 0.70710677, %v343_v53  ;;  %v269_v58 = vpop.f32.mrb[2].mxu0  ;;  %v346_v59 = vpop.f32.mrb[2].mxu1 }
 0x247   :  { %854 = verf.f32 %v359_v54  ;;  %v270_v60 = vadd.f32 %v269_v58, %v180_v41  ;;  %v347_v61 = vadd.f32 %v346_v59, %v188_v42  ;;  %v271_v62 = vpop.f32.mrb[3].mxu0  ;;  %v348_v63 = vpop.f32.mrb[3].mxu1  ;;  %v352_v14 = vmul.f32 0.5, %v266_v52  ;;  %v636_v41 = vld [vmem:[%s1112_s6] ss:$0 sm:$0xff]  ;;  %s936_s6 = scalar_lea.vmem %s622_s21, 256 }
 0x248   :  { %856 = verf.f32 %v361_v55  ;;  %v272_v2 = vadd.f32 %v271_v62, %v184_v43  ;;  %v349_v3 = vadd.f32 %v348_v63, %v192_v45  ;;  %v354_v16 = vmul.f32 0.5, %v343_v53  ;;  %p937_p10 = scmp.ne.s32.totalorder %s622_s21, %s936_s6  ;;  %p942_p12 = scmp.lt.s32.totalorder %s936_s6, %s936_s6 }
 0x249   :  { %858 = verf.f32 %v360_v56  ;;  %v363_v4 = vmul.f32 0.70710677, %v270_v60  ;;  %v365_v5 = vmul.f32 0.70710677, %v347_v61  ;;  %v355_v31 = vmul.f32 0.5, %v270_v60 }
 0x24a   :  { %860 = verf.f32 %v362_v57  ;;  %v364_v6 = vmul.f32 0.70710677, %v272_v2  ;;  %v366_v7 = vmul.f32 0.70710677, %v349_v3  ;;  %v356_v29 = vmul.f32 0.5, %v272_v2  ;;  %p943_p13 = por %p942_p12, %p941_p11 }
 0x24b   :  { %862 = verf.f32 %v363_v4  ;;  %v358_v32 = vmul.f32 0.5, %v349_v3  ;;  %v357_v34 = vmul.f32 0.5, %v347_v61 }
 0x24c   :  { %864 = verf.f32 %v365_v5  ;;  %p944_p0 = pnand %p943_p13, %p937_p10 }
 0x24d   :  { %866 = verf.f32 %v364_v6 }
 0x24e   :  { %868 = verf.f32 %v366_v7 }
 0x251   :  { %v855_v8 = vpop.eup %854 }
 0x252   :  { %v857_v9 = vpop.eup %856  ;;  %v375_v11 = vadd.f32 1.0, %v855_v8 }
 0x253   :  { %v859_v10 = vpop.eup %858  ;;  %v377_v13 = vadd.f32 1.0, %v857_v9 }
 0x254   :  { %v861_v12 = vpop.eup %860  ;;  %v376_v40 = vadd.f32 1.0, %v859_v10  ;;  %v383_v22 = vmul.f32 %v375_v11, %v351_v15 }
 0x255   :  { %v378_v17 = vadd.f32 1.0, %v861_v12  ;;  %v863_v18 = vpop.eup %862  ;;  %v385_v44 = vmul.f32 %v377_v13, %v353_v19 }
 0x256   :  { %v384_v20 = vmul.f32 %v376_v40, %v352_v14  ;;  %v865_v21 = vpop.eup %864  ;;  %v379_v26 = vadd.f32 1.0, %v863_v18 }
 0x257   :  { %v386_v23 = vmul.f32 %v378_v17, %v354_v16  ;;  %v867_v25 = vpop.eup %866  ;;  %v381_v28 = vadd.f32 1.0, %v865_v21 }
 0x258   :  { %526 = vmatprep.mubr.f32.mxu0 %v384_v20  ;;  %v869_v27 = vpop.eup %868  ;;  %v380_v30 = vadd.f32 1.0, %v867_v25  ;;  %v387_v36 = vmul.f32 %v379_v26, %v355_v31 }
 0x259   :  { %601 = vmatprep.mubr.f32.mxu1 %v386_v23  ;;  %527 = vmatmul.mubr.f32.vlgmr.msra.gmra.mrb[4].mxu0 %v383_v22  ;;  %v382_v33 = vadd.f32 1.0, %v869_v27  ;;  %v389_v37 = vmul.f32 %v381_v28, %v357_v34 }
 0x25a   :  { %602 = vmatmul.mubr.f32.vlgmr.msra.gmra.mrb[4].mxu1 %v385_v44  ;;  %v388_v35 = vmul.f32 %v380_v30, %v356_v29 }
 0x25b   :  { %v390_v24 = vmul.f32 %v382_v33, %v358_v32 }
 0x25c   :  { %531 = vmatprep.mubr.f32.mxu0 %v388_v35 }
 0x25d   :  { %606 = vmatprep.mubr.f32.mxu1 %v390_v24  ;;  %532 = vmatmul.mubr.f32.gmra.mrb[6].mxu0 %v387_v36 }
 0x25e   :  { %607 = vmatmul.mubr.f32.gmra.mrb[6].mxu1 %v389_v37 }
 0x32c   :  { %v669_v38 = vpop.f32.mrb[4].mxu0 }
 0x32d   :  { %v707_v39 = vpop.f32.mrb[4].mxu1  ;;  %v670_v42 = vpop.f32.mrb[5].mxu0 }
 0x32e   :  { %v671_v43 = vadd.f32 %v670_v42, %v669_v38  ;;  %v708_v45 = vpop.f32.mrb[5].mxu1 }
 0x32f   :  { %v709_v46 = vadd.f32 %v708_v45, %v707_v39 }
 0x330   :  { %v529_v47 = vadd.f32 %v671_v43, %v636_v41  ;;  %v672_v48 = vpop.f32.mrb[6].mxu0 }
 0x331   :  { %v710_v50 = vpop.f32.mrb[6].mxu1  ;;  %v673_v51 = vpop.f32.mrb[7].mxu0 }
 0x332   :  { %v604_v49 = vadd.f32 %v709_v46, %v529_v47  ;;  %v674_v52 = vadd.f32 %v673_v51, %v672_v48  ;;  %v711_v53 = vpop.f32.mrb[7].mxu1 }
 0x333   :  { %v712_v55 = vadd.f32 %v711_v53, %v710_v50 }
 0x334   :  { %v612_v54 = vadd.f32 %v604_v49, %v1055_v0  ;;  %v534_v56 = vadd.f32 %v674_v52, %v636_v41 }
 0x336   :  { %614 = vst [vmem:[#allocation8] sm:$0xff] %v612_v54  ;;  %v609_v57 = vadd.f32 %v712_v55, %v534_v56 }
 0x338   :  { %v613_v58 = vadd.f32 %v609_v57, %v1058_v1 }
 0x33a   :  { %615 = vst [vmem:[#allocation8 + $0x8] sm:$0xff] %v613_v58 }
 0x33b   :  { %947 = shalt.err (!%p944_p0)
}
 0x33c   :  { %s948_s24 = scalar_lea.hbm %s1113_s7, 256 }
 0x33d   :  { %p949_p1 = scmp.ne.s32.totalorder %s1113_s7, %s948_s24  ;;  %p952_p2 = scmp.lt.u32.totalorder %s948_s24, %s1113_s7 }
 0x33f   :  { %p954_p3 = pnand %p952_p2, %p949_p1 }
 0x341   :  { %957 = shalt.err (!%p954_p3)
}
 0x342   :  { %627 = dma.vmem_to_hbm [thread:$0]  %s622_s21, 256, %s1113_s7, [#allocation4], %s968_s3, %s968_s3, %s969_s25  }
 0x343   :  { %962 = dma.done.wait [#allocation4], 256  }
 0x344   :  { %963 = vsyncadd [#allocation4], 4294967040 }
 0x345   :  { %631 = vsyncpa [#allocation3], 1 }
 0x346   :  { %632 = vsyncpa [#allocation6], 1 }
 0x347   :  { %633 = vsyncpa [#allocation4], 1 }

</bundles_post_ra>
